<compile_context>
chip_gen: v6e
topology: v6e:2x2x1
jax: 0.10.0
libtpu: 0.0.40
codegen_flags: <defaults>
</compile_context>

<pallas_src>
import math

import jax
import jax.numpy as jnp
from jax.experimental import pallas as pl
from jax.experimental.pallas import tpu as pltpu

N_EMBD = 64
N_HEAD = 8
HEAD_SIZE = N_EMBD // N_HEAD  # 8


def mha_kernel(x_ref, wqkv_ref, wp_ref, bp_ref, o_ref):
    bt, t, e = x_ref.shape
    m = bt * t
    xf = x_ref[...].reshape(m, e)                     # (M, 64) bf16, leading-dim merge

    # Fused Q|K|V projection: one (M, 64) @ (64, 192) MXU matmul, f32 accumulate.
    qkv = jnp.dot(xf, wqkv_ref[...], preferred_element_type=jnp.float32)   # (M, 192) f32

    # Head-major stacks (H*bt, T, D); batch index is h*bt + b.  The relayout is
    # done once per operand via static lane slices + leading-axis concat.
    def head_stack(part):
        base = part * e
        pieces = [
            qkv[:, base + h * HEAD_SIZE: base + (h + 1) * HEAD_SIZE]
            .reshape(bt, t, HEAD_SIZE)
            for h in range(N_HEAD)
        ]
        return jnp.concatenate(pieces, axis=0).astype(jnp.bfloat16)   # (H*bt, T, D)

    q = head_stack(0)
    k = head_stack(1)
    v = head_stack(2)

    # One batched einsum pair over all heads & sequences (single leading batch dim).
    scale = HEAD_SIZE ** (-0.5)
    s = jnp.einsum('bqd,bkd->bqk', q, k,
                   preferred_element_type=jnp.float32) * scale        # (H*bt, T, T) f32
    w = jax.nn.softmax(s, axis=-1)                                    # f32, no causal mask
    o = jnp.einsum('bqk,bkd->bqd', w.astype(jnp.bfloat16), v,
                   preferred_element_type=jnp.float32)                # (H*bt, T, D) f32

    # Back to (M, 64) rows with head-major (h, d) columns (matches wp's row order).
    attn = jnp.concatenate([o[h * bt:(h + 1) * bt] for h in range(N_HEAD)],
                           axis=-1)                                   # (bt, T, 64)
    attn_f = attn.reshape(m, e).astype(jnp.bfloat16)

    # Output projection + bias, f32 accumulate.
    out = jnp.dot(attn_f, wp_ref[...], preferred_element_type=jnp.float32)
    out = out + bp_ref[...]                                           # (1, 64) broadcast
    o_ref[...] = out.reshape(bt, t, e).astype(o_ref.dtype)


def _tpu_config():
    """Returns (num_tensorcores sharing the grid, block VMEM budget, scoped VMEM limit)."""
    try:
        kind = jax.devices()[0].device_kind.lower()
    except Exception:
        kind = ""
    if "v7" in kind:
        # dual-TC, 64 MiB physical VMEM -> stay inside the default scoped limit
        return 2, 16 << 20, None
    if any(g in kind for g in ("v4", "v5", "v6")):
        # single-TC (v5e/v6e) with 128 MiB physical VMEM: big blocks, raised limit
        return 1, 40 << 20, 64 << 20
    return 1, 8 << 20, None


def _block_vmem_bytes(bt, t):
    """Rough per-grid-step VMEM footprint: double-buffered I/O blocks, resident
    weights and all in-kernel intermediates (incl. the bt*H*T^2 scores)."""
    m = bt * t
    e = N_EMBD
    x_blk = m * e * 2                               # bf16 input block
    out_blk = m * e * 4                             # f32 output block
    weights = e * 3 * e * 2 + e * e * 2 + e * 4     # wqkv + wp (bf16) + bias (f32)
    qkv = m * 3 * e * (4 + 2)                       # f32 projection + bf16 head stacks
    scores = N_HEAD * bt * t * t * (4 + 4 + 2)      # logits, softmax (f32), bf16 probs
    attn = m * e * (4 + 4 + 2 + 4)                  # per-head out, concat, bf16 copy, proj
    return 2 * (x_blk + out_blk) + weights + qkv + scores + attn


def _choose_block_batch(B, t, num_tc, budget_bytes):
    divisors = [d for d in range(1, B + 1) if B % d == 0]
    fitting = [d for d in divisors if _block_vmem_bytes(d, t) <= budget_bytes] or [1]
    best = max(fitting)          # single-TC: biggest block, no minimum grid length
    if num_tc > 1:
        # dual-TC (v7x): prefer a grid that's a multiple of the core count so both
        # TCs get equal work, but never shrink M = bt*T below ~512 rows for it.
        even = [d for d in fitting if (B // d) % num_tc == 0]
        if even and max(even) * t >= 512:
            best = max(even)
    return best


def multi_head_attention(x, params, block_batch=None):
    B, T, E = x.shape
    assert E == N_EMBD
    # in-kernel (M, .) -> (bt, T, .) reshapes assume sublane-aligned T
    assert T % 8 == 0, "T must be a multiple of 8"

    num_tc, budget, vmem_limit = _tpu_config()
    bt = _choose_block_batch(B, T, num_tc, budget) if block_batch is None else block_batch
    assert B % bt == 0

    # bf16 matmul operands (f32 accumulation inside the kernel).
    x_bf = x.astype(jnp.bfloat16)
    wqkv = jnp.concatenate([params["wq"], params["wk"], params["wv"]],
                           axis=1).astype(jnp.bfloat16)       # (64, 192): cols = (q|k|v, head, d)
    wp = params["wp"].astype(jnp.bfloat16)                    # (64, 64)
    bp = params["bp"].reshape(1, E).astype(jnp.float32)       # (1, 64)

    return pl.pallas_call(
        mha_kernel,
        out_shape=jax.ShapeDtypeStruct((B, T, E), x.dtype),
        grid=(B // bt,),
        in_specs=[
            pl.BlockSpec((bt, T, E), lambda b: (b, 0, 0)),     # x block (bf16)
            pl.BlockSpec((E, 3 * E), lambda b: (0, 0)),        # resident fused QKV weight
            pl.BlockSpec((E, E), lambda b: (0, 0)),            # resident projection weight
            pl.BlockSpec((1, E), lambda b: (0, 0)),            # resident projection bias
        ],
        out_specs=pl.BlockSpec((bt, T, E), lambda b: (b, 0, 0)),
        compiler_params=pltpu.CompilerParams(
            dimension_semantics=("parallel",),
            vmem_limit_bytes=vmem_limit),
    )(x_bf, wqkv, wp, bp)


def reference_mha(x, params):
    """Pure-JAX f32 reference mirroring the PyTorch forward (eval mode)."""
    def one(xb):
        q = xb @ params["wq"]
        k = xb @ params["wk"]
        v = xb @ params["wv"]
        outs = []
        for hd in range(N_HEAD):
            sl = slice(hd * HEAD_SIZE, (hd + 1) * HEAD_SIZE)
            wei = (q[:, sl] @ k[:, sl].T) * HEAD_SIZE ** (-0.5)
            wei = jax.nn.softmax(wei, axis=-1)
            outs.append(wei @ v[:, sl])
        return jnp.concatenate(outs, axis=-1) @ params["wp"] + params["bp"]
    return jax.vmap(one)(x)


def init_params(key):
    """Torch-default-style init: U(-1/sqrt(in), 1/sqrt(in)); weights are (in, out)."""
    ks = jax.random.split(key, 5)
    bound = 1.0 / math.sqrt(N_EMBD)
    u = lambda k, shape: jax.random.uniform(k, shape, jnp.float32, -bound, bound)
    return {
        # per-head K/Q/V weights (no bias), stacked head-major along output dim
        "wq": u(ks[0], (N_EMBD, N_EMBD)),
        "wk": u(ks[1], (N_EMBD, N_EMBD)),
        "wv": u(ks[2], (N_EMBD, N_EMBD)),
        "wp": u(ks[3], (N_EMBD, N_EMBD)),
        "bp": u(ks[4], (N_EMBD,)),
    }


if __name__ == "__main__":
    key = jax.random.PRNGKey(0)
    k_x, k_p = jax.random.split(key)
    params = init_params(k_p)

    # (B, T, forced block_batch or None for auto).  The last case forces a
    # multi-step pipelined grid (bt=4 -> 4 grid steps) to exercise that path.
    for B, T, bb in ((2, 8, None), (8, 8, None), (16, 8, 4)):
        x = jax.random.normal(jax.random.fold_in(k_x, B), (B, T, N_EMBD),
                              jnp.float32)
        out = jax.block_until_ready(multi_head_attention(x, params, block_batch=bb))
        ref = reference_mha(x, params)
        assert out.shape == (B, T, N_EMBD)
        max_err = float(jnp.max(jnp.abs(out - ref)))
        # bf16 matmul operands vs f32 reference -> slightly looser tolerance
        assert jnp.allclose(out, ref, atol=2e-2, rtol=2e-2), f"max err {max_err}"

    print("KERNEL_OK")
</pallas_src>

<mosaic_0001>
module attributes {stable_mosaic.version = 11 : i64} {
  func.func @mha_kernel(%arg0: i32, %arg1: memref<2x8x64xbf16, #tpu.memory_space<vmem>>, %arg2: memref<64x192xbf16, #tpu.memory_space<vmem>>, %arg3: memref<64x64xbf16, #tpu.memory_space<vmem>>, %arg4: memref<1x64xf32, #tpu.memory_space<vmem>>, %arg5: memref<2x8x64xf32, #tpu.memory_space<vmem>>) attributes {dimension_semantics = [#tpu.dimension_semantics<parallel>], iteration_bounds = array<i64: 1>, scalar_prefetch = 0 : i64, scratch_operands = 0 : i64, tpu.core_type = #tpu.core_type<tc>, window_params = [{transform_indices = @transform_0, window_bounds = array<i64: 2, 8, 64>}, {pipeline_mode = #tpu.pipeline_mode<synchronous>, transform_indices = @transform_1, window_bounds = array<i64: 64, 192>}, {pipeline_mode = #tpu.pipeline_mode<synchronous>, transform_indices = @transform_2, window_bounds = array<i64: 64, 64>}, {pipeline_mode = #tpu.pipeline_mode<synchronous>, transform_indices = @transform_3, window_bounds = array<i64: 1, 64>}, {transform_indices = @transform_4, window_bounds = array<i64: 2, 8, 64>}]} {
    %c0 = arith.constant 0 : index
    %c0_0 = arith.constant 0 : index
    %c0_1 = arith.constant 0 : index
    %0 = vector.load %arg1[%c0, %c0_0, %c0_1] : memref<2x8x64xbf16, #tpu.memory_space<vmem>>, vector<2x8x64xbf16>
    %1 = vector.shape_cast %0 : vector<2x8x64xbf16> to vector<16x64xbf16>
    %c0_2 = arith.constant 0 : index
    %c0_3 = arith.constant 0 : index
    %2 = vector.load %arg2[%c0_2, %c0_3] : memref<64x192xbf16, #tpu.memory_space<vmem>>, vector<64x192xbf16>
    %cst = arith.constant dense<0.000000e+00> : vector<16x192xf32>
    %3 = tpu.matmul %1, %2, %cst {dimension_numbers = #tpu.dot_dimension_numbers<[1], [0], [0], [1], [0, 0, 1, 1], [], []>} : vector<16x64xbf16>, vector<64x192xbf16>, vector<16x192xf32> -> vector<16x192xf32>
    %4 = vector.extract_strided_slice %3 {offsets = [0, 0], sizes = [16, 8], strides = [1, 1]} : vector<16x192xf32> to vector<16x8xf32>
    %5 = vector.shape_cast %4 : vector<16x8xf32> to vector<2x8x8xf32>
    %6 = vector.extract_strided_slice %3 {offsets = [0, 8], sizes = [16, 8], strides = [1, 1]} : vector<16x192xf32> to vector<16x8xf32>
    %7 = vector.shape_cast %6 : vector<16x8xf32> to vector<2x8x8xf32>
    %8 = vector.extract_strided_slice %3 {offsets = [0, 16], sizes = [16, 8], strides = [1, 1]} : vector<16x192xf32> to vector<16x8xf32>
    %9 = vector.shape_cast %8 : vector<16x8xf32> to vector<2x8x8xf32>
    %10 = vector.extract_strided_slice %3 {offsets = [0, 24], sizes = [16, 8], strides = [1, 1]} : vector<16x192xf32> to vector<16x8xf32>
    %11 = vector.shape_cast %10 : vector<16x8xf32> to vector<2x8x8xf32>
    %12 = vector.extract_strided_slice %3 {offsets = [0, 32], sizes = [16, 8], strides = [1, 1]} : vector<16x192xf32> to vector<16x8xf32>
    %13 = vector.shape_cast %12 : vector<16x8xf32> to vector<2x8x8xf32>
    %14 = vector.extract_strided_slice %3 {offsets = [0, 40], sizes = [16, 8], strides = [1, 1]} : vector<16x192xf32> to vector<16x8xf32>
    %15 = vector.shape_cast %14 : vector<16x8xf32> to vector<2x8x8xf32>
    %16 = vector.extract_strided_slice %3 {offsets = [0, 48], sizes = [16, 8], strides = [1, 1]} : vector<16x192xf32> to vector<16x8xf32>
    %17 = vector.shape_cast %16 : vector<16x8xf32> to vector<2x8x8xf32>
    %18 = vector.extract_strided_slice %3 {offsets = [0, 56], sizes = [16, 8], strides = [1, 1]} : vector<16x192xf32> to vector<16x8xf32>
    %19 = vector.shape_cast %18 : vector<16x8xf32> to vector<2x8x8xf32>
    %20 = tpu.concatenate %5, %7, %9, %11, %13, %15, %17, %19 in 0 : vector<2x8x8xf32>, vector<2x8x8xf32>, vector<2x8x8xf32>, vector<2x8x8xf32>, vector<2x8x8xf32>, vector<2x8x8xf32>, vector<2x8x8xf32>, vector<2x8x8xf32> -> vector<16x8x8xf32>
    %21 = arith.truncf %20 : vector<16x8x8xf32> to vector<16x8x8xbf16>
    %22 = vector.extract_strided_slice %3 {offsets = [0, 64], sizes = [16, 8], strides = [1, 1]} : vector<16x192xf32> to vector<16x8xf32>
    %23 = vector.shape_cast %22 : vector<16x8xf32> to vector<2x8x8xf32>
    %24 = vector.extract_strided_slice %3 {offsets = [0, 72], sizes = [16, 8], strides = [1, 1]} : vector<16x192xf32> to vector<16x8xf32>
    %25 = vector.shape_cast %24 : vector<16x8xf32> to vector<2x8x8xf32>
    %26 = vector.extract_strided_slice %3 {offsets = [0, 80], sizes = [16, 8], strides = [1, 1]} : vector<16x192xf32> to vector<16x8xf32>
    %27 = vector.shape_cast %26 : vector<16x8xf32> to vector<2x8x8xf32>
    %28 = vector.extract_strided_slice %3 {offsets = [0, 88], sizes = [16, 8], strides = [1, 1]} : vector<16x192xf32> to vector<16x8xf32>
    %29 = vector.shape_cast %28 : vector<16x8xf32> to vector<2x8x8xf32>
    %30 = vector.extract_strided_slice %3 {offsets = [0, 96], sizes = [16, 8], strides = [1, 1]} : vector<16x192xf32> to vector<16x8xf32>
    %31 = vector.shape_cast %30 : vector<16x8xf32> to vector<2x8x8xf32>
    %32 = vector.extract_strided_slice %3 {offsets = [0, 104], sizes = [16, 8], strides = [1, 1]} : vector<16x192xf32> to vector<16x8xf32>
    %33 = vector.shape_cast %32 : vector<16x8xf32> to vector<2x8x8xf32>
    %34 = vector.extract_strided_slice %3 {offsets = [0, 112], sizes = [16, 8], strides = [1, 1]} : vector<16x192xf32> to vector<16x8xf32>
    %35 = vector.shape_cast %34 : vector<16x8xf32> to vector<2x8x8xf32>
    %36 = vector.extract_strided_slice %3 {offsets = [0, 120], sizes = [16, 8], strides = [1, 1]} : vector<16x192xf32> to vector<16x8xf32>
    %37 = vector.shape_cast %36 : vector<16x8xf32> to vector<2x8x8xf32>
    %38 = tpu.concatenate %23, %25, %27, %29, %31, %33, %35, %37 in 0 : vector<2x8x8xf32>, vector<2x8x8xf32>, vector<2x8x8xf32>, vector<2x8x8xf32>, vector<2x8x8xf32>, vector<2x8x8xf32>, vector<2x8x8xf32>, vector<2x8x8xf32> -> vector<16x8x8xf32>
    %39 = arith.truncf %38 : vector<16x8x8xf32> to vector<16x8x8xbf16>
    %40 = vector.extract_strided_slice %3 {offsets = [0, 128], sizes = [16, 8], strides = [1, 1]} : vector<16x192xf32> to vector<16x8xf32>
    %41 = vector.shape_cast %40 : vector<16x8xf32> to vector<2x8x8xf32>
    %42 = vector.extract_strided_slice %3 {offsets = [0, 136], sizes = [16, 8], strides = [1, 1]} : vector<16x192xf32> to vector<16x8xf32>
    %43 = vector.shape_cast %42 : vector<16x8xf32> to vector<2x8x8xf32>
    %44 = vector.extract_strided_slice %3 {offsets = [0, 144], sizes = [16, 8], strides = [1, 1]} : vector<16x192xf32> to vector<16x8xf32>
    %45 = vector.shape_cast %44 : vector<16x8xf32> to vector<2x8x8xf32>
    %46 = vector.extract_strided_slice %3 {offsets = [0, 152], sizes = [16, 8], strides = [1, 1]} : vector<16x192xf32> to vector<16x8xf32>
    %47 = vector.shape_cast %46 : vector<16x8xf32> to vector<2x8x8xf32>
    %48 = vector.extract_strided_slice %3 {offsets = [0, 160], sizes = [16, 8], strides = [1, 1]} : vector<16x192xf32> to vector<16x8xf32>
    %49 = vector.shape_cast %48 : vector<16x8xf32> to vector<2x8x8xf32>
    %50 = vector.extract_strided_slice %3 {offsets = [0, 168], sizes = [16, 8], strides = [1, 1]} : vector<16x192xf32> to vector<16x8xf32>
    %51 = vector.shape_cast %50 : vector<16x8xf32> to vector<2x8x8xf32>
    %52 = vector.extract_strided_slice %3 {offsets = [0, 176], sizes = [16, 8], strides = [1, 1]} : vector<16x192xf32> to vector<16x8xf32>
    %53 = vector.shape_cast %52 : vector<16x8xf32> to vector<2x8x8xf32>
    %54 = vector.extract_strided_slice %3 {offsets = [0, 184], sizes = [16, 8], strides = [1, 1]} : vector<16x192xf32> to vector<16x8xf32>
    %55 = vector.shape_cast %54 : vector<16x8xf32> to vector<2x8x8xf32>
    %56 = tpu.concatenate %41, %43, %45, %47, %49, %51, %53, %55 in 0 : vector<2x8x8xf32>, vector<2x8x8xf32>, vector<2x8x8xf32>, vector<2x8x8xf32>, vector<2x8x8xf32>, vector<2x8x8xf32>, vector<2x8x8xf32>, vector<2x8x8xf32> -> vector<16x8x8xf32>
    %57 = arith.truncf %56 : vector<16x8x8xf32> to vector<16x8x8xbf16>
    "tpu.trace_start"() <{level = 10 : i32, message = "bqd,bkd->bqk"}> : () -> ()
    %cst_4 = arith.constant dense<0.000000e+00> : vector<16x8x8xf32>
    %58 = tpu.matmul %21, %39, %cst_4 {dimension_numbers = #tpu.dot_dimension_numbers<[2], [2], [1], [1], [0, 0, 0, 1, 1, 1], [0], [0]>} : vector<16x8x8xbf16>, vector<16x8x8xbf16>, vector<16x8x8xf32> -> vector<16x8x8xf32>
    "tpu.trace_stop"() : () -> ()
    %cst_5 = arith.constant 0.353553385 : f32
    %59 = vector.broadcast %cst_5 : f32 to vector<16x8x8xf32>
    %60 = arith.mulf %58, %59 : vector<16x8x8xf32>
    %cst_6 = arith.constant dense<0xFF800000> : vector<16x8xf32>
    %61 = vector.multi_reduction <maximumf>, %60, %cst_6 [2] : vector<16x8x8xf32> to vector<16x8xf32>
    %cst_7 = arith.constant 0xFF800000 : f32
    %62 = vector.broadcast %cst_7 : f32 to vector<16x8xf32>
    %63 = arith.maximumf %62, %61 : vector<16x8xf32>
    %64 = vector.shape_cast %63 : vector<16x8xf32> to vector<16x8x1xf32>
    %65 = vector.broadcast %64 : vector<16x8x1xf32> to vector<16x8x8xf32>
    %66 = arith.subf %60, %65 : vector<16x8x8xf32>
    %67 = math.exp %66 : vector<16x8x8xf32>
    %cst_8 = arith.constant dense<0.000000e+00> : vector<16x8xf32>
    %68 = vector.multi_reduction <add>, %67, %cst_8 [2] : vector<16x8x8xf32> to vector<16x8xf32>
    %69 = vector.shape_cast %68 : vector<16x8xf32> to vector<16x8x1xf32>
    %70 = vector.broadcast %69 : vector<16x8x1xf32> to vector<16x8x8xf32>
    %71 = arith.divf %67, %70 : vector<16x8x8xf32>
    %72 = arith.truncf %71 : vector<16x8x8xf32> to vector<16x8x8xbf16>
    "tpu.trace_start"() <{level = 10 : i32, message = "bqk,bkd->bqd"}> : () -> ()
    %cst_9 = arith.constant dense<0.000000e+00> : vector<16x8x8xf32>
    %73 = tpu.matmul %72, %57, %cst_9 {dimension_numbers = #tpu.dot_dimension_numbers<[2], [1], [1], [2], [0, 0, 0, 1, 1, 2], [0], [0]>} : vector<16x8x8xbf16>, vector<16x8x8xbf16>, vector<16x8x8xf32> -> vector<16x8x8xf32>
    "tpu.trace_stop"() : () -> ()
    %74 = vector.extract_strided_slice %73 {offsets = [0, 0, 0], sizes = [2, 8, 8], strides = [1, 1, 1]} : vector<16x8x8xf32> to vector<2x8x8xf32>
    %75 = vector.extract_strided_slice %73 {offsets = [2, 0, 0], sizes = [2, 8, 8], strides = [1, 1, 1]} : vector<16x8x8xf32> to vector<2x8x8xf32>
    %76 = vector.extract_strided_slice %73 {offsets = [4, 0, 0], sizes = [2, 8, 8], strides = [1, 1, 1]} : vector<16x8x8xf32> to vector<2x8x8xf32>
    %77 = vector.extract_strided_slice %73 {offsets = [6, 0, 0], sizes = [2, 8, 8], strides = [1, 1, 1]} : vector<16x8x8xf32> to vector<2x8x8xf32>
    %78 = vector.extract_strided_slice %73 {offsets = [8, 0, 0], sizes = [2, 8, 8], strides = [1, 1, 1]} : vector<16x8x8xf32> to vector<2x8x8xf32>
    %79 = vector.extract_strided_slice %73 {offsets = [10, 0, 0], sizes = [2, 8, 8], strides = [1, 1, 1]} : vector<16x8x8xf32> to vector<2x8x8xf32>
    %80 = vector.extract_strided_slice %73 {offsets = [12, 0, 0], sizes = [2, 8, 8], strides = [1, 1, 1]} : vector<16x8x8xf32> to vector<2x8x8xf32>
    %81 = vector.extract_strided_slice %73 {offsets = [14, 0, 0], sizes = [2, 8, 8], strides = [1, 1, 1]} : vector<16x8x8xf32> to vector<2x8x8xf32>
    %82 = tpu.concatenate %74, %75, %76, %77, %78, %79, %80, %81 in 2 : vector<2x8x8xf32>, vector<2x8x8xf32>, vector<2x8x8xf32>, vector<2x8x8xf32>, vector<2x8x8xf32>, vector<2x8x8xf32>, vector<2x8x8xf32>, vector<2x8x8xf32> -> vector<2x8x64xf32>
    %83 = vector.shape_cast %82 : vector<2x8x64xf32> to vector<16x64xf32>
    %84 = arith.truncf %83 : vector<16x64xf32> to vector<16x64xbf16>
    %c0_10 = arith.constant 0 : index
    %c0_11 = arith.constant 0 : index
    %85 = vector.load %arg3[%c0_10, %c0_11] : memref<64x64xbf16, #tpu.memory_space<vmem>>, vector<64x64xbf16>
    %cst_12 = arith.constant dense<0.000000e+00> : vector<16x64xf32>
    %86 = tpu.matmul %84, %85, %cst_12 {dimension_numbers = #tpu.dot_dimension_numbers<[1], [0], [0], [1], [0, 0, 1, 1], [], []>} : vector<16x64xbf16>, vector<64x64xbf16>, vector<16x64xf32> -> vector<16x64xf32>
    %c0_13 = arith.constant 0 : index
    %c0_14 = arith.constant 0 : index
    %87 = vector.load %arg4[%c0_13, %c0_14] : memref<1x64xf32, #tpu.memory_space<vmem>>, vector<1x64xf32>
    %88 = vector.broadcast %87 : vector<1x64xf32> to vector<16x64xf32>
    %89 = arith.addf %86, %88 : vector<16x64xf32>
    %90 = vector.shape_cast %89 : vector<16x64xf32> to vector<2x8x64xf32>
    %c0_15 = arith.constant 0 : index
    %c0_16 = arith.constant 0 : index
    %c0_17 = arith.constant 0 : index
    %91 = vector.load %arg5[%c0_15, %c0_16, %c0_17] : memref<2x8x64xf32, #tpu.memory_space<vmem>>, vector<2x8x64xf32>
    tpu.vector_store %arg5[%c0_15, %c0_16, %c0_17], %90 {strides = array<i32>} : memref<2x8x64xf32, #tpu.memory_space<vmem>>, vector<2x8x64xf32>,
    return
  }
  func.func @transform_0(%arg0: i32) -> (i32, i32, i32) {
    %c0_i32 = arith.constant 0 : i32
    %c0_i32_0 = arith.constant 0 : i32
    %c0_i32_1 = arith.constant 0 : i32
    return %arg0, %c0_i32, %c0_i32_0 : i32, i32, i32
  }
  func.func @transform_1(%arg0: i32) -> (i32, i32) {
    %c0_i32 = arith.constant 0 : i32
    %c0_i32_0 = arith.constant 0 : i32
    %c0_i32_1 = arith.constant 0 : i32
    return %c0_i32, %c0_i32_0 : i32, i32
  }
  func.func @transform_2(%arg0: i32) -> (i32, i32) {
    %c0_i32 = arith.constant 0 : i32
    %c0_i32_0 = arith.constant 0 : i32
    %c0_i32_1 = arith.constant 0 : i32
    return %c0_i32, %c0_i32_0 : i32, i32
  }
  func.func @transform_3(%arg0: i32) -> (i32, i32) {
    %c0_i32 = arith.constant 0 : i32
    %c0_i32_0 = arith.constant 0 : i32
    %c0_i32_1 = arith.constant 0 : i32
    return %c0_i32, %c0_i32_0 : i32, i32
  }
  func.func @transform_4(%arg0: i32) -> (i32, i32, i32) {
    %c0_i32 = arith.constant 0 : i32
    %c0_i32_0 = arith.constant 0 : i32
    %c0_i32_1 = arith.constant 0 : i32
    return %arg0, %c0_i32, %c0_i32_0 : i32, i32, i32
  }
}

</mosaic_0001>

<bundles_post_ra>
// kernel: tpu_custom_call.1
= control target key start
LH: loop header
LB: loop body
LE: loop exit
PB: predicated region body
PF: predicated region fallthrough
CT: control target
= control target key end

     0   :  { %9 = vsyncpa [#allocation3], 0  ;;  %s3333_s0 = inlined_call_operand.hbm [shape: bf16[2,8,64], index: 0, kind: input, shape index: {}]   ;;  %s3334_s1 = inlined_call_operand.hbm [shape: bf16[64,192], index: 1, kind: input, shape index: {}]   ;;  %s3335_s2 = inlined_call_operand.hbm [shape: bf16[64,64], index: 2, kind: input, shape index: {}]   ;;  %s3336_s3 = inlined_call_operand.vmem [shape: f32[1,64], index: 3, kind: input, shape index: {}]   ;;  %s3337_s4 = inlined_call_operand.hbm [shape: f32[2,8,64], index: 4, kind: output, shape index: {}]  }
   0x1   :  { %10 = vsyncpa [#allocation6], 0 }
   0x2   :  { %11 = vsyncpa [#allocation4], 0  ;;  %s2804_s15 = smov [#allocation5]  }
   0x3   :  { %s29_s16 = sshll.u32 %s2804_s15, 4  ;;  %s30_s16 = int_to_ptr.vmem [resolvable:$true] %s29_s16 }
   0x4   :  { %s2726_s17 = scalar_lea.vmem %s30_s16, 1024  ;;  %p2731_p1 = scmp.lt.s32.totalorder %s30_s16, %s30_s16 }
   0x5   :  { %p2727_p0 = scmp.ne.s32.totalorder %s30_s16, %s2726_s17  ;;  %p2732_p2 = scmp.lt.s32.totalorder %s2726_s17, %s2726_s17 }
   0x7   :  { %p2733_p3 = por %p2732_p2, %p2731_p1 }
   0x9   :  { %p2734_p4 = pnand %p2733_p3, %p2727_p0 }
   0xb   :  { %2737 = shalt.err (!%p2734_p4)
}
   0xc   :  { %s2805_s18 = smov 128   ;;  %s2806_s19 = smov 8  }
   0xd   :  { %35 = dma.hbm_to_vmem [thread:$0]  %s3334_s1, 1024, %s30_s16, [#allocation6], %s2805_s18, %s2805_s18, %s2806_s19  }
   0xe   :  { %s2807_s22 = smov [#allocation2]  }
   0xf   :  { %s17_s23 = sshll.u32 %s2807_s22, 4  ;;  %s18_s23 = int_to_ptr.vmem [resolvable:$true] %s17_s23 }
  0x10   :  { %s2746_s24 = scalar_lea.vmem %s18_s23, 128  ;;  %p2751_p6 = scmp.lt.s32.totalorder %s18_s23, %s18_s23 }
  0x11   :  { %p2747_p5 = scmp.ne.s32.totalorder %s18_s23, %s2746_s24  ;;  %p2752_p7 = scmp.lt.s32.totalorder %s2746_s24, %s2746_s24 }
  0x13   :  { %p2753_p8 = por %p2752_p7, %p2751_p6 }
  0x15   :  { %p2754_p9 = pnand %p2753_p8, %p2747_p5 }
  0x17   :  { %2757 = shalt.err (!%p2754_p9)
}
  0x18   :  { %s2808_s25 = smov 64   ;;  %s2809_s26 = smov 4  }
  0x19   :  { %23 = dma.hbm_to_vmem [thread:$0]  %s3333_s0, 128, %s18_s23, [#allocation3], %s2808_s25, %s2808_s25, %s2809_s26  }
  0x1a   :  { %s2810_s29 = smov [#allocation7]  }
  0x1b   :  { %s41_s1 = sshll.u32 %s2810_s29, 4  ;;  %s42_s1 = int_to_ptr.vmem [resolvable:$true] %s41_s1 }
  0x1c   :  { %s2766_s30 = scalar_lea.vmem %s42_s1, 512  ;;  %p2771_p11 = scmp.lt.s32.totalorder %s42_s1, %s42_s1 }
  0x1d   :  { %p2767_p10 = scmp.ne.s32.totalorder %s42_s1, %s2766_s30  ;;  %p2772_p12 = scmp.lt.s32.totalorder %s2766_s30, %s2766_s30 }
  0x1f   :  { %p2773_p13 = por %p2772_p12, %p2771_p11 }
  0x21   :  { %p2774_p0 = pnand %p2773_p13, %p2767_p10 }
  0x23   :  { %2777 = shalt.err (!%p2774_p0)
}
  0x24   :  { %47 = dma.hbm_to_vmem [thread:$0]  %s3335_s2, 512, %s42_s1, [#allocation6], %s2808_s25, %s2808_s25, %s2809_s26  }
  0x25   :  { %2798 = dma.done.wait [#allocation3], 128  }
  0x26   :  { %2799 = vsyncadd [#allocation3], 4294967168 }
  0x27   :  { %2800 = dma.done.wait [#allocation6], 1536  }
  0x28   :  { %2801 = vsyncadd [#allocation6], 4294965760  ;;  %v2811_v0 = vmov 0   ;;  %v2637_v1 = vld [vmem:[#allocation5 + $0x34] ss:$8 sps:$4 sm:$0xff]   ;;  %vm115_vm0 = vcmask 523264  }
  0x29   :  { %151 = vmatprep.mubr.bf16.mxu0 %v2811_v0  ;;  %v2639_v2 = vld [vmem:[#allocation5 + $0x30] ss:$8 sps:$4 sm:$0xff]   ;;  %127 = vmatprep.subr.bf16.mxu0 %v2637_v1  ;;  %v2640_v3 = vld [vmem:[#allocation5 + $0x24] ss:$8 sps:$4 sm:$0xff]   ;;  %v2642_v4 = vld [vmem:[#allocation5 + $0x20] ss:$8 sps:$4 sm:$0xff]  }
  0x2a   :  { %128 = vmatpush1.bf16.msra.mxu0 %v2639_v2  ;;  %v2643_v5 = vld [vmem:[#allocation5 + $0x14] ss:$8 sps:$4 sm:$0xff]   ;;  %v2645_v6 = vld [vmem:[#allocation5 + $0x10] ss:$8 sps:$4 sm:$0xff]   ;;  %v2646_v7 = vld [vmem:[#allocation5 + $0x4] ss:$8 sps:$4 sm:$0xff]  }
  0x2b   :  { %129 = vmatprep.subr.bf16.mxu0 %v2640_v3  ;;  %v2648_v8 = vld [vmem:[#allocation5] ss:$8 sps:$4 sm:$0xff]   ;;  %v2649_v9 = vld [vmem:[#allocation2] sm:$0xff]   ;;  %v2812_v11 = vmov 0.0   ;;  %s2813_s0 = smov 120   ;;  %s2814_s2 = smov 112  }
  0x2c   :  { %2309 = vmatprep.subr.bf16.mxu1 %v2812_v11  ;;  %vm2815_vm1 = vmmov 0   ;;  %s2816_s7 = smov 96   ;;  %s2817_s8 = smov 104   ;;  %vm285_vm2 = vcmask 64512   ;;  %vm1278_vm3 = vcmask 1043456   ;;  %vm2070_vm4 = vcmask 130048  }
  0x2d   :  { %2311 = vmatprep.mubr.msk.bf16.mxu1 %vm2815_vm1, %v2812_v11  ;;  %s2818_s9 = smov 88   ;;  %s2819_s10 = smov 80   ;;  %vm2073_vm5 = vcmask 195584   ;;  %vm2076_vm6 = vcmask 261120   ;;  %vm2079_vm7 = vcmask 326656   ;;  %vm2082_vm8 = vcmask 392192  }
  0x2e   :  { %130 = vmatpush1.bf16.msra.mxu0 %v2642_v4  ;;  %s2820_s11 = smov 72   ;;  %s2821_s12 = smov 16   ;;  %vm2085_vm9 = vcmask 457728  }
  0x2f   :  { %131 = vmatprep.subr.bf16.mxu0 %v2643_v5  ;;  %s2822_s13 = smov 24   ;;  %s2823_s14 = smov 32  }
  0x30   :  { %s2824_s15 = smov 40   ;;  %s2825_s16 = smov 48  }
  0x31   :  { %s2826_s17 = smov 56   ;;  %s2827_s22 = smov [#allocation8]  }
  0x32   :  { %132 = vmatpush1.bf16.msra.mxu0 %v2645_v6  ;;  %s2179_s23 = sshll.u32 %s2827_s22, 4  ;;  %s2180_s23 = int_to_ptr.vmem [resolvable:$true] %s2179_s23 }
  0x33   :  { %133 = vmatprep.subr.bf16.mxu0 %v2646_v7  ;;  %s2778_s24 = scalar_lea.vmem %s2180_s23, 256  ;;  %p2783_p2 = scmp.lt.s32.totalorder %s2180_s23, %s2180_s23 }
  0x34   :  { %p2779_p1 = scmp.ne.s32.totalorder %s2180_s23, %s2778_s24  ;;  %p2784_p3 = scmp.lt.s32.totalorder %s2778_s24, %s2778_s24 }
  0x36   :  { %134 = vmatpush1.bf16.msra.mxu0 %v2648_v8  ;;  %p2785_p4 = por %p2784_p3, %p2783_p2 }
  0x37   :  { %2333 = vmatprep.subr.bf16.mxu0 %v2812_v11 }
  0x38   :  { %p2786_p5 = pnand %p2785_p4, %p2779_p1 }
  0x39   :  { %2201 = vmatmul.mubr.msk.bf16.vlgmr.msra.gmra.mxu0 %vm115_vm0, %v2649_v9 }
  0x3a   :  { %2335 = vmatprep.mubr.msk.bf16.mxu0 %vm2815_vm1, %v2812_v11 }
  0xf9   :  { %v153_v10 = vpop.f32.mrf.mxu0 }
  0xfa   :  { %164 = vrot.lane.b32.xlu0 %v153_v10, %s2813_s0  ;;  %v206_v15 = vpack.c.bf16 %v153_v10, %v153_v10 }
  0xfb   :  { %v2873_v12 = vpop.f32.mrf.mxu0 }
  0xfd   :  { %v157_v13 = vpop.f32.mrf.mxu0 }
  0xfe   :  { %166 = vrot.lane.b32.xlu0 %v157_v13, %s2813_s0  ;;  %v2537_v14 = vpack.i.bf16 %v157_v13, %v153_v10  ;;  %v207_v16 = vpack.c.bf16 %v157_v13, %v157_v13 }
 0x100   :  { %2538 = vrot.lane.b32.xlu1 %v2537_v14, %s2814_s2 }
 0x102   :  { %2548 = vrot.lane.b32.xlu0 %v2537_v14, %s2816_s7 }
 0x104   :  { %2543 = vrot.lane.b32.xlu1 %v2537_v14, %s2817_s8 }
 0x106   :  { %283 = vrot.lane.b32.xlu0 %v206_v15, %s2808_s25 }
 0x108   :  { %2553 = vrot.lane.b32.xlu1 %v2537_v14, %s2818_s9 }
 0x10a   :  { %333 = vrot.lane.b32.xlu0 %v207_v16, %s2808_s25 }
 0x10c   :  { %2558 = vrot.lane.b32.xlu1 %v2537_v14, %s2819_s10 }
 0x110   :  { %2563 = vrot.lane.b32.xlu1 %v2537_v14, %s2820_s11 }
 0x16c   :  { %v165_v17 = vpop.permute.xlu0 %164 }
 0x16d   :  { %v2888_v18 = vpack.c.bf16 %v165_v17, %v165_v17 }
 0x16f   :  { %382 = vrot.lane.b32.xlu0 %v2888_v18, %s2808_s25 }
 0x170   :  { %v167_v19 = vpop.permute.xlu0 %166 }
 0x171   :  { %v2892_v20 = vpack.c.bf16 %v167_v19, %v167_v19  ;;  %v266_v19 = vpack.c.bf16 %v2873_v12, %v2873_v12 }
 0x172   :  { %v2539_v21 = vpop.permute.xlu1 %2538 }
 0x173   :  { %v2541_v22 = vunpack.i.h.bf16 %v2539_v21  ;;  %v2540_v23 = vunpack.i.l.bf16 %v2539_v21  ;;  %431 = vrot.lane.b32.xlu1 %v2892_v20, %s2808_s25 }
 0x174   :  { %v2549_v24 = vpop.permute.xlu0 %2548 }
 0x175   :  { %v2896_v25 = vpack.c.bf16 %v2541_v22, %v2541_v22  ;;  %v2898_v26 = vpack.c.bf16 %v2540_v23, %v2540_v23  ;;  %v2551_v30 = vunpack.i.h.bf16 %v2549_v24  ;;  %v2550_v32 = vunpack.i.l.bf16 %v2549_v24  ;;  %v3032_v23 = vpop.f32.mrf.mxu0 }
 0x176   :  { %v2544_v27 = vpop.permute.xlu1 %2543  ;;  %v1280_v22 = vsel %vm1278_vm3, %v266_v19, 0  ;;  %v267_v24 = vpack.c.bf16 %v3032_v23, %v3032_v23 }
 0x177   :  { %v2546_v28 = vunpack.i.h.bf16 %v2544_v27  ;;  %v2545_v29 = vunpack.i.l.bf16 %v2544_v27  ;;  %529 = vrot.lane.b32.xlu1 %v2896_v25, %s2808_s25  ;;  %480 = vrot.lane.b32.xlu0 %v2898_v26, %s2808_s25  ;;  %v2914_v40 = vpack.c.bf16 %v2551_v30, %v2551_v30  ;;  %v2916_v41 = vpack.c.bf16 %v2550_v32, %v2550_v32 }
 0x178   :  { %v284_v31 = vpop.permute.xlu0 %283 }
 0x179   :  { %v290_v33 = vsel %vm285_vm2, %v284_v31, 0  ;;  %v2905_v34 = vpack.c.bf16 %v2546_v28, %v2546_v28  ;;  %v2907_v35 = vpack.c.bf16 %v2545_v29, %v2545_v29 }
 0x17a   :  { %v2554_v36 = vpop.permute.xlu1 %2553  ;;  %2310 = vmatpush3.bf16.xpose.msra.mxu1 %v290_v33 }
 0x17b   :  { %627 = vrot.lane.b32.xlu1 %v2905_v34, %s2808_s25  ;;  %578 = vrot.lane.b32.xlu0 %v2907_v35, %s2808_s25  ;;  %v2556_v37 = vunpack.i.h.bf16 %v2554_v36  ;;  %v2555_v38 = vunpack.i.l.bf16 %v2554_v36 }
 0x17c   :  { %2315 = vmatprep.subr.bf16.mxu1 %v2812_v11  ;;  %v334_v39 = vpop.permute.xlu0 %333 }
 0x17d   :  { %v339_v43 = vsel %vm285_vm2, %v334_v39, 0  ;;  %v2924_v46 = vpack.c.bf16 %v2556_v37, %v2556_v37  ;;  %v2926_v47 = vpack.c.bf16 %v2555_v38, %v2555_v38 }
 0x17e   :  { %v2559_v42 = vpop.permute.xlu1 %2558 }
 0x17f   :  { %725 = vrot.lane.b32.xlu1 %v2914_v40, %s2808_s25  ;;  %676 = vrot.lane.b32.xlu0 %v2916_v41, %s2808_s25  ;;  %v2561_v44 = vunpack.i.h.bf16 %v2559_v42  ;;  %v2560_v45 = vunpack.i.l.bf16 %v2559_v42 }
 0x181   :  { %2312 = vmatmul.mubr.msk.bf16.vlgmr.msra.gmra.mxu1 %vm285_vm2, %v206_v15  ;;  %v2935_v51 = vpack.c.bf16 %v2561_v44, %v2561_v44  ;;  %v2937_v52 = vpack.c.bf16 %v2560_v45, %v2560_v45 }
 0x182   :  { %v2564_v48 = vpop.permute.xlu1 %2563  ;;  %2316 = vmatpush3.bf16.xpose.msra.mxu1 %v339_v43  ;;  %2317 = vmatprep.mubr.msk.bf16.mxu1 %vm2815_vm1, %v2812_v11 }
 0x183   :  { %823 = vrot.lane.b32.xlu1 %v2924_v46, %s2808_s25  ;;  %774 = vrot.lane.b32.xlu0 %v2926_v47, %s2808_s25  ;;  %v2566_v49 = vunpack.i.h.bf16 %v2564_v48  ;;  %v2565_v50 = vunpack.i.l.bf16 %v2564_v48 }
 0x184   :  { %2321 = vmatprep.subr.bf16.mxu1 %v2812_v11 }
 0x185   :  { %v2944_v53 = vpack.c.bf16 %v2566_v49, %v2566_v49  ;;  %v2946_v54 = vpack.c.bf16 %v2565_v50, %v2565_v50 }
 0x187   :  { %921 = vrot.lane.b32.xlu1 %v2935_v51, %s2808_s25  ;;  %872 = vrot.lane.b32.xlu0 %v2937_v52, %s2808_s25 }
 0x189   :  { %2318 = vmatmul.mubr.msk.bf16.vlgmr.msra.gmra.mxu1 %vm285_vm2, %v207_v16 }
 0x18a   :  { %2323 = vmatprep.mubr.msk.bf16.mxu1 %vm2815_vm1, %v2812_v11 }
 0x18b   :  { %1019 = vrot.lane.b32.xlu1 %v2944_v53, %s2808_s25  ;;  %970 = vrot.lane.b32.xlu0 %v2946_v54, %s2808_s25 }
 0x1e1   :  { %v383_v55 = vpop.permute.xlu0 %382 }
 0x1e2   :  { %v388_v56 = vsel %vm285_vm2, %v383_v55, 0 }
 0x1e3   :  { %2322 = vmatpush3.bf16.xpose.msra.mxu1 %v388_v56 }
 0x1e4   :  { %2327 = vmatprep.subr.bf16.mxu1 %v2812_v11 }
 0x1e5   :  { %v432_v57 = vpop.permute.xlu1 %431 }
 0x1e6   :  { %v437_v59 = vsel %vm285_vm2, %v432_v57, 0 }
 0x1e9   :  { %v481_v58 = vpop.permute.xlu0 %480  ;;  %v530_v61 = vpop.permute.xlu1 %529 }
 0x1ea   :  { %v486_v60 = vsel %vm285_vm2, %v481_v58, 0  ;;  %2324 = vmatmul.mubr.msk.bf16.vlgmr.msra.gmra.mxu1 %vm285_vm2, %v2888_v18  ;;  %v535_v63 = vsel %vm285_vm2, %v530_v61, 0 }
 0x1eb   :  { %2328 = vmatpush3.bf16.xpose.msra.mxu1 %v437_v59  ;;  %2334 = vmatpush3.bf16.xpose.msra.mxu0 %v486_v60 }
 0x1ec   :  { %2329 = vmatprep.mubr.msk.bf16.mxu1 %vm2815_vm1, %v2812_v11  ;;  %2339 = vmatprep.subr.bf16.mxu1 %v2812_v11 }
 0x1ed   :  { %2345 = vmatprep.subr.bf16.mxu0 %v2812_v11  ;;  %v579_v62 = vpop.permute.xlu0 %578  ;;  %v628_v1 = vpop.permute.xlu1 %627 }
 0x1ee   :  { %v584_v0 = vsel %vm285_vm2, %v579_v62, 0  ;;  %v633_v3 = vsel %vm285_vm2, %v628_v1, 0 }
 0x1f1   :  { %v677_v2 = vpop.permute.xlu0 %676  ;;  %v726_v5 = vpop.permute.xlu1 %725 }
 0x1f2   :  { %2330 = vmatmul.mubr.msk.bf16.vlgmr.msra.gmra.mxu1 %vm285_vm2, %v2892_v20  ;;  %2336 = vmatmul.mubr.msk.bf16.vlgmr.msra.gmra.mxu0 %vm285_vm2, %v2898_v26  ;;  %v682_v4 = vsel %vm285_vm2, %v677_v2, 0  ;;  %v731_v7 = vsel %vm285_vm2, %v726_v5, 0 }
 0x1f3   :  { %2340 = vmatpush3.bf16.xpose.msra.mxu1 %v535_v63  ;;  %2346 = vmatpush3.bf16.xpose.msra.mxu0 %v584_v0 }
 0x1f4   :  { %2341 = vmatprep.mubr.msk.bf16.mxu1 %vm2815_vm1, %v2812_v11  ;;  %2347 = vmatprep.mubr.msk.bf16.mxu0 %vm2815_vm1, %v2812_v11 }
 0x1f5   :  { %2351 = vmatprep.subr.bf16.mxu1 %v2812_v11  ;;  %2357 = vmatprep.subr.bf16.mxu0 %v2812_v11  ;;  %v775_v6 = vpop.permute.xlu0 %774  ;;  %v824_v9 = vpop.permute.xlu1 %823 }
 0x1f6   :  { %v780_v8 = vsel %vm285_vm2, %v775_v6, 0  ;;  %v829_v13 = vsel %vm285_vm2, %v824_v9, 0 }
 0x1f9   :  { %v873_v10 = vpop.permute.xlu0 %872  ;;  %v922_v15 = vpop.permute.xlu1 %921 }
 0x1fa   :  { %2342 = vmatmul.mubr.msk.bf16.vlgmr.msra.gmra.mxu1 %vm285_vm2, %v2896_v25  ;;  %2348 = vmatmul.mubr.msk.bf16.vlgmr.msra.gmra.mxu0 %vm285_vm2, %v2907_v35  ;;  %v878_v14 = vsel %vm285_vm2, %v873_v10, 0  ;;  %v927_v17 = vsel %vm285_vm2, %v922_v15, 0  ;;  %v1326_v25 = vsel %vm1278_vm3, %v267_v24, 0 }
 0x1fb   :  { %2352 = vmatpush3.bf16.xpose.msra.mxu1 %v633_v3  ;;  %2358 = vmatpush3.bf16.xpose.msra.mxu0 %v682_v4 }
 0x1fc   :  { %2353 = vmatprep.mubr.msk.bf16.mxu1 %vm2815_vm1, %v2812_v11  ;;  %2359 = vmatprep.mubr.msk.bf16.mxu0 %vm2815_vm1, %v2812_v11 }
 0x1fd   :  { %2363 = vmatprep.subr.bf16.mxu1 %v2812_v11  ;;  %2369 = vmatprep.subr.bf16.mxu0 %v2812_v11  ;;  %v971_v16 = vpop.permute.xlu0 %970  ;;  %v1020_v20 = vpop.permute.xlu1 %1019 }
 0x1fe   :  { %v976_v18 = vsel %vm285_vm2, %v971_v16, 0  ;;  %v1025_v21 = vsel %vm285_vm2, %v1020_v20, 0 }
 0x202   :  { %2354 = vmatmul.mubr.msk.bf16.vlgmr.msra.gmra.mxu1 %vm285_vm2, %v2905_v34  ;;  %2360 = vmatmul.mubr.msk.bf16.vlgmr.msra.gmra.mxu0 %vm285_vm2, %v2916_v41 }
 0x203   :  { %2364 = vmatpush3.bf16.xpose.msra.mxu1 %v731_v7  ;;  %2370 = vmatpush3.bf16.xpose.msra.mxu0 %v780_v8  ;;  %v3078_v8 = vpack.i.bf16 %v3032_v23, %v2873_v12 }
 0x204   :  { %2365 = vmatprep.mubr.msk.bf16.mxu1 %vm2815_vm1, %v2812_v11  ;;  %2371 = vmatprep.mubr.msk.bf16.mxu0 %vm2815_vm1, %v2812_v11 }
 0x205   :  { %2375 = vmatprep.subr.bf16.mxu1 %v2812_v11  ;;  %2381 = vmatprep.subr.bf16.mxu0 %v2812_v11 }
 0x20a   :  { %2366 = vmatmul.mubr.msk.bf16.vlgmr.msra.gmra.mxu1 %vm285_vm2, %v2914_v40  ;;  %2372 = vmatmul.mubr.msk.bf16.vlgmr.msra.gmra.mxu0 %vm285_vm2, %v2926_v47 }
 0x20b   :  { %2376 = vmatpush3.bf16.xpose.msra.mxu1 %v829_v13  ;;  %2382 = vmatpush3.bf16.xpose.msra.mxu0 %v878_v14 }
 0x20c   :  { %2377 = vmatprep.mubr.msk.bf16.mxu1 %vm2815_vm1, %v2812_v11  ;;  %2383 = vmatprep.mubr.msk.bf16.mxu0 %vm2815_vm1, %v2812_v11 }
 0x20d   :  { %2387 = vmatprep.subr.bf16.mxu1 %v2812_v11  ;;  %2393 = vmatprep.subr.bf16.mxu0 %v2812_v11 }
 0x212   :  { %2378 = vmatmul.mubr.msk.bf16.vlgmr.msra.gmra.mxu1 %vm285_vm2, %v2924_v46  ;;  %2384 = vmatmul.mubr.msk.bf16.vlgmr.msra.gmra.mxu0 %vm285_vm2, %v2937_v52 }
 0x213   :  { %2388 = vmatpush3.bf16.xpose.msra.mxu1 %v927_v17  ;;  %2394 = vmatpush3.bf16.xpose.msra.mxu0 %v976_v18 }
 0x214   :  { %2389 = vmatprep.mubr.msk.bf16.mxu1 %vm2815_vm1, %v2812_v11  ;;  %2395 = vmatprep.mubr.msk.bf16.mxu0 %vm2815_vm1, %v2812_v11 }
 0x215   :  { %2399 = vmatprep.subr.bf16.mxu1 %v2812_v11  ;;  %2405 = vmatprep.subr.bf16.mxu0 %v2812_v11 }
 0x21a   :  { %2390 = vmatmul.mubr.msk.bf16.vlgmr.msra.gmra.mxu1 %vm285_vm2, %v2935_v51  ;;  %2396 = vmatmul.mubr.msk.bf16.vlgmr.msra.gmra.mxu0 %vm285_vm2, %v2946_v54 }
 0x21b   :  { %2400 = vmatpush3.bf16.xpose.msra.mxu1 %v1025_v21  ;;  %2406 = vmatpush3.bf16.msra.mxu0 %v1280_v22 }
 0x21c   :  { %2401 = vmatprep.mubr.msk.bf16.mxu1 %vm2815_vm1, %v2812_v11  ;;  %2411 = vmatprep.subr.bf16.mxu1 %v2812_v11 }
 0x21d   :  { %2407 = vmatprep.mubr.msk.bf16.mxu0 %vm2815_vm1, %v2812_v11  ;;  %2417 = vmatprep.subr.bf16.mxu0 %v2812_v11 }
 0x222   :  { %2402 = vmatmul.mubr.msk.bf16.vlgmr.msra.gmra.mxu1 %vm285_vm2, %v2944_v53 }
 0x223   :  { %2412 = vmatpush3.bf16.msra.mxu1 %v1326_v25  ;;  %2413 = vmatprep.mubr.msk.bf16.mxu1 %vm2815_vm1, %v2812_v11 }
 0x224   :  { %2423 = vmatprep.subr.bf16.mxu1 %v2812_v11 }
 0x241   :  { %v326_v26 = vpop.f32.mrf.mxu1 }
 0x242   :  { %v3048_v27 = vmul.f32 0.35355338, %v326_v26 }
 0x243   :  { %v2313_v28 = vpop.f32.mrf.mxu1 }
 0x244   :  { %v1083_v29 = vsel %vm285_vm2, %v3048_v27, -inf }
 0x245   :  { %v329_v30 = vpop.f32.mrf.mxu1  ;;  %1084 = vmax.xlane.f32.xlu0 %v1083_v29 }
 0x247   :  { %v2314_v31 = vpop.f32.mrf.mxu1 }
 0x249   :  { %v375_v32 = vpop.f32.mrf.mxu1 }
 0x24a   :  { %v3052_v33 = vmul.f32 0.35355338, %v375_v32 }
 0x24b   :  { %v2319_v34 = vpop.f32.mrf.mxu1 }
 0x24c   :  { %v1086_v35 = vsel %vm285_vm2, %v3052_v33, -inf }
 0x24d   :  { %1087 = vmax.xlane.f32.xlu1 %v1086_v35  ;;  %v378_v36 = vpop.f32.mrf.mxu1 }
 0x24f   :  { %v2320_v37 = vpop.f32.mrf.mxu1 }
 0x2aa   :  { %v424_v38 = vpop.f32.mrf.mxu1 }
 0x2ab   :  { %v3056_v39 = vmul.f32 0.35355338, %v424_v38 }
 0x2ac   :  { %v2325_v40 = vpop.f32.mrf.mxu1 }
 0x2ad   :  { %v1089_v41 = vsel %vm285_vm2, %v3056_v39, -inf }
 0x2ae   :  { %1090 = vmax.xlane.f32.xlu0 %v1089_v41  ;;  %v427_v42 = vpop.f32.mrf.mxu1 }
 0x2b0   :  { %v2326_v43 = vpop.f32.mrf.mxu1 }
 0x2b2   :  { %v473_v44 = vpop.f32.mrf.mxu1  ;;  %v522_v45 = vpop.f32.mrf.mxu0 }
 0x2b3   :  { %v3060_v46 = vmul.f32 0.35355338, %v473_v44  ;;  %v3062_v47 = vmul.f32 0.35355338, %v522_v45 }
 0x2b4   :  { %v2331_v48 = vpop.f32.mrf.mxu1  ;;  %v2337_v49 = vpop.f32.mrf.mxu0 }
 0x2b5   :  { %v1092_v50 = vsel %vm285_vm2, %v3060_v46, -inf  ;;  %v1095_v51 = vsel %vm285_vm2, %v3062_v47, -inf }
 0x2b6   :  { %1093 = vmax.xlane.f32.xlu0 %v1092_v50  ;;  %v476_v52 = vpop.f32.mrf.mxu1  ;;  %1096 = vmax.xlane.f32.xlu1 %v1095_v51  ;;  %v525_v53 = vpop.f32.mrf.mxu0 }
 0x2b8   :  { %v2332_v54 = vpop.f32.mrf.mxu1  ;;  %v2338_v55 = vpop.f32.mrf.mxu0 }
 0x2ba   :  { %v571_v56 = vpop.f32.mrf.mxu1  ;;  %v620_v57 = vpop.f32.mrf.mxu0 }
 0x2bb   :  { %v3068_v58 = vmul.f32 0.35355338, %v571_v56  ;;  %v3095_v54 = vmul.f32 0.35355338, %v620_v57 }
 0x2bc   :  { %v2343_v59 = vpop.f32.mrf.mxu1  ;;  %v2349_v60 = vpop.f32.mrf.mxu0 }
 0x2bd   :  { %v1098_v61 = vsel %vm285_vm2, %v3068_v58, -inf }
 0x2be   :  { %1099 = vmax.xlane.f32.xlu0 %v1098_v61  ;;  %v574_v62 = vpop.f32.mrf.mxu1  ;;  %v623_v63 = vpop.f32.mrf.mxu0 }
 0x2c0   :  { %v2344_v0 = vpop.f32.mrf.mxu1  ;;  %v2350_v1 = vpop.f32.mrf.mxu0 }
 0x2c1   :  { %v1101_v1 = vsel %vm285_vm2, %v3095_v54, -inf }
 0x2c2   :  { %v669_v2 = vpop.f32.mrf.mxu1  ;;  %v718_v3 = vpop.f32.mrf.mxu0 }
 0x2c3   :  { %v3072_v4 = vmul.f32 0.35355338, %v669_v2  ;;  %v3104_v63 = vmul.f32 0.35355338, %v718_v3 }
 0x2c4   :  { %v2355_v5 = vpop.f32.mrf.mxu1  ;;  %v2361_v6 = vpop.f32.mrf.mxu0 }
 0x2c5   :  { %v1104_v7 = vsel %vm285_vm2, %v3072_v4, -inf  ;;  %v1107_v2 = vsel %vm285_vm2, %v3104_v63, -inf }
 0x2c6   :  { %1105 = vmax.xlane.f32.xlu0 %v1104_v7  ;;  %v672_v9 = vpop.f32.mrf.mxu1  ;;  %v721_v10 = vpop.f32.mrf.mxu0 }
 0x2c7   :  { %2568 = vrot.lane.b32.xlu1 %v3078_v8, %s2813_s0 }
 0x2c8   :  { %v2356_v13 = vpop.f32.mrf.mxu1  ;;  %v2362_v14 = vpop.f32.mrf.mxu0 }
 0x2ca   :  { %v767_v15 = vpop.f32.mrf.mxu1  ;;  %v816_v16 = vpop.f32.mrf.mxu0 }
 0x2cb   :  { %v3082_v17 = vmul.f32 0.35355338, %v767_v15  ;;  %v3110_v57 = vmul.f32 0.35355338, %v816_v16 }
 0x2cc   :  { %v2367_v18 = vpop.f32.mrf.mxu1  ;;  %v2373_v19 = vpop.f32.mrf.mxu0 }
 0x2cd   :  { %v1110_v20 = vsel %vm285_vm2, %v3082_v17, -inf  ;;  %v1113_v3 = vsel %vm285_vm2, %v3110_v57, -inf }
 0x2ce   :  { %1111 = vmax.xlane.f32.xlu0 %v1110_v20  ;;  %v770_v12 = vpop.f32.mrf.mxu1  ;;  %v819_v21 = vpop.f32.mrf.mxu0 }
 0x2cf   :  { %v1085_v52 = vpop.xlane.xlu0 %1084 }
 0x2d0   :  { %v2368_v22 = vpop.f32.mrf.mxu1  ;;  %v2374_v23 = vpop.f32.mrf.mxu0  ;;  %v1131_v55 = vsub.f32 %v3048_v27, %v1085_v52 }
 0x2d2   :  { %v865_v24 = vpop.f32.mrf.mxu1  ;;  %v914_v26 = vpop.f32.mrf.mxu0  ;;  %v1147_v0 = vmul.f32 1.442695, %v1131_v55 }
 0x2d3   :  { %v3086_v25 = vmul.f32 0.35355338, %v865_v24  ;;  %v3114_v5 = vmul.f32 0.35355338, %v914_v26 }
 0x2d4   :  { %v2379_v28 = vpop.f32.mrf.mxu1  ;;  %v2385_v29 = vpop.f32.mrf.mxu0 }
 0x2d5   :  { %v1116_v30 = vsel %vm285_vm2, %v3086_v25, -inf  ;;  %v1119_v7 = vsel %vm285_vm2, %v3114_v5, -inf }
 0x2d6   :  { %v1088_v31 = vpop.xlane.xlu1 %1087  ;;  %1117 = vmax.xlane.f32.xlu0 %v1116_v30  ;;  %v868_v32 = vpop.f32.mrf.mxu1 }
 0x2d7   :  { %v1132_v34 = vsub.f32 %v3052_v33, %v1088_v31  ;;  %v917_v35 = vpop.f32.mrf.mxu0 }
 0x2d8   :  { %v2380_v36 = vpop.f32.mrf.mxu1 }
 0x2d9   :  { %v1149_v37 = vmul.f32 1.442695, %v1132_v34  ;;  %v2386_v38 = vpop.f32.mrf.mxu0 }
 0x2da   :  { %v963_v40 = vpop.f32.mrf.mxu1 }
 0x2db   :  { %2654 = vpow2.f32 %v1149_v37  ;;  %v3091_v41 = vmul.f32 0.35355338, %v963_v40  ;;  %v1012_v42 = vpop.f32.mrf.mxu0 }
 0x2dc   :  { %v2391_v43 = vpop.f32.mrf.mxu1  ;;  %2656 = vpow2.f32 %v1147_v0  ;;  %v3118_v6 = vmul.f32 0.35355338, %v1012_v42 }
 0x2dd   :  { %v2397_v44 = vpop.f32.mrf.mxu0  ;;  %v1122_v45 = vsel %vm285_vm2, %v3091_v41, -inf }
 0x2de   :  { %1123 = vmax.xlane.f32.xlu0 %v1122_v45  ;;  %v966_v48 = vpop.f32.mrf.mxu1  ;;  %v1125_v9 = vsel %vm285_vm2, %v3118_v6, -inf }
 0x2df   :  { %v1015_v49 = vpop.f32.mrf.mxu0 }
 0x2e0   :  { %v2392_v50 = vpop.f32.mrf.mxu1 }
 0x2e1   :  { %v2398_v51 = vpop.f32.mrf.mxu0 }
 0x2e2   :  { %v1061_v33 = vpop.f32.mrf.mxu1 }
 0x2e3   :  { %v3100_v61 = vmul.f32 0.35355338, %v1061_v33 }
 0x2e4   :  { %v2403_v53 = vpop.f32.mrf.mxu1 }
 0x2e5   :  { %v1128_v27 = vsel %vm285_vm2, %v3100_v61, -inf }
 0x2e6   :  { %v1064_v56 = vpop.f32.mrf.mxu1 }
 0x2e8   :  { %v3098_v59 = vpop.eup %2654  ;;  %v2404_v60 = vpop.f32.mrf.mxu1 }
 0x2e9   :  { %v1182_v62 = vsel %vm285_vm2, %v3098_v59, 0.0  ;;  %v3124_v10 = vpop.eup %2656 }
 0x2ea   :  { %1183 = vadd.xlane.f32.xlu0 %v1182_v62  ;;  %v1179_v13 = vsel %vm285_vm2, %v3124_v10, 0.0 }
 0x2eb   :  { %1102 = vmax.xlane.f32.xlu1 %v1101_v1 }
 0x2ee   :  { %1129 = vmax.xlane.f32.xlu0 %v1128_v27 }
 0x2ef   :  { %1108 = vmax.xlane.f32.xlu1 %v1107_v2 }
 0x2f3   :  { %1114 = vmax.xlane.f32.xlu1 %v1113_v3 }
 0x2f7   :  { %1120 = vmax.xlane.f32.xlu1 %v1119_v7 }
 0x2fb   :  { %1126 = vmax.xlane.f32.xlu1 %v1125_v9 }
 0x2ff   :  { %1180 = vadd.xlane.f32.xlu1 %v1179_v13 }
 0x304   :  { %2573 = vrot.lane.b32.xlu0 %v3078_v8, %s2814_s2 }
 0x310   :  { %2578 = vrot.lane.b32.xlu1 %v3078_v8, %s2817_s8 }
 0x337   :  { %v1091_v14 = vpop.xlane.xlu0 %1090 }
 0x338   :  { %v1133_v15 = vsub.f32 %v3056_v39, %v1091_v14 }
 0x33a   :  { %v1151_v16 = vmul.f32 1.442695, %v1133_v15 }
 0x33c   :  { %2658 = vpow2.f32 %v1151_v16 }
 0x33f   :  { %v1094_v18 = vpop.xlane.xlu0 %1093  ;;  %v1097_v19 = vpop.xlane.xlu1 %1096 }
 0x340   :  { %v1134_v20 = vsub.f32 %v3060_v46, %v1094_v18  ;;  %v1135_v12 = vsub.f32 %v3062_v47, %v1097_v19 }
 0x342   :  { %v1153_v21 = vmul.f32 1.442695, %v1134_v20  ;;  %v1155_v22 = vmul.f32 1.442695, %v1135_v12 }
 0x343   :  { %v3152_v37 = vpop.permute.xlu1 %2568 }
 0x344   :  { %2660 = vpow2.f32 %v1153_v21  ;;  %v2571_v53 = vunpack.i.h.bf16 %v3152_v37  ;;  %v2570_v21 = vunpack.i.l.bf16 %v3152_v37 }
 0x345   :  { %2662 = vpow2.f32 %v1155_v22 }
 0x346   :  { %v269_v62 = vpack.c.bf16 %v2571_v53, %v2571_v53 }
 0x347   :  { %v1100_v23 = vpop.xlane.xlu0 %1099 }
 0x348   :  { %v1136_v24 = vsub.f32 %v3068_v58, %v1100_v23  ;;  %v1418_v2 = vsel %vm1278_vm3, %v269_v62, 0 }
 0x349   :  { %v3136_v26 = vpop.eup %2658 }
 0x34a   :  { %v1157_v28 = vmul.f32 1.442695, %v1136_v24  ;;  %v1185_v39 = vsel %vm285_vm2, %v3136_v26, 0.0 }
 0x34b   :  { %1186 = vadd.xlane.f32.xlu1 %v1185_v39 }
 0x34c   :  { %2664 = vpow2.f32 %v1157_v28  ;;  %v268_v28 = vpack.c.bf16 %v2570_v21, %v2570_v21 }
 0x34f   :  { %v1106_v32 = vpop.xlane.xlu0 %1105 }
 0x350   :  { %v1138_v43 = vsub.f32 %v3072_v4, %v1106_v32  ;;  %v1372_v32 = vsel %vm1278_vm3, %v268_v28, 0 }
 0x351   :  { %v3140_v29 = vpop.eup %2660 }
 0x352   :  { %v3142_v46 = vpop.eup %2662  ;;  %v1188_v47 = vsel %vm285_vm2, %v3140_v29, 0.0  ;;  %v1161_v49 = vmul.f32 1.442695, %v1138_v43 }
 0x353   :  { %1189 = vadd.xlane.f32.xlu0 %v1188_v47  ;;  %v1191_v30 = vsel %vm285_vm2, %v3142_v46, 0.0 }
 0x354   :  { %1192 = vadd.xlane.f32.xlu1 %v1191_v30 }
 0x357   :  { %v1112_v34 = vpop.xlane.xlu0 %1111 }
 0x358   :  { %v1140_v50 = vsub.f32 %v3082_v17, %v1112_v34 }
 0x359   :  { %v3148_v58 = vpop.eup %2664 }
 0x35a   :  { %v1194_v31 = vsel %vm285_vm2, %v3148_v58, 0.0  ;;  %v1165_v55 = vmul.f32 1.442695, %v1140_v50 }
 0x35b   :  { %1195 = vadd.xlane.f32.xlu0 %v1194_v31 }
 0x35f   :  { %v1118_v35 = vpop.xlane.xlu0 %1117 }
 0x360   :  { %v1142_v17 = vsub.f32 %v3086_v25, %v1118_v35 }
 0x362   :  { %v1169_v3 = vmul.f32 1.442695, %v1142_v17 }
 0x367   :  { %v1124_v36 = vpop.xlane.xlu0 %1123 }
 0x368   :  { %v1144_v9 = vsub.f32 %v3091_v41, %v1124_v36 }
 0x36a   :  { %v1173_v16 = vmul.f32 1.442695, %v1144_v9 }
 0x373   :  { %v1184_v38 = vpop.xlane.xlu0 %1183 }
 0x374   :  { %2666 = vrcp.f32 %v1184_v38  ;;  %v1103_v40 = vpop.xlane.xlu1 %1102 }
 0x375   :  { %v1137_v42 = vsub.f32 %v3095_v54, %v1103_v40 }
 0x377   :  { %v1159_v44 = vmul.f32 1.442695, %v1137_v42  ;;  %v1130_v36 = vpop.xlane.xlu0 %1129 }
 0x378   :  { %v1109_v45 = vpop.xlane.xlu1 %1108  ;;  %v1146_v37 = vsub.f32 %v3100_v61, %v1130_v36 }
 0x379   :  { %2668 = vpow2.f32 %v1159_v44  ;;  %v1139_v48 = vsub.f32 %v3104_v63, %v1109_v45 }
 0x37a   :  { %v1177_v38 = vmul.f32 1.442695, %v1146_v37 }
 0x37b   :  { %v1163_v51 = vmul.f32 1.442695, %v1139_v48  ;;  %v2574_v61 = vpop.permute.xlu0 %2573 }
 0x37c   :  { %v1115_v33 = vpop.xlane.xlu1 %1114  ;;  %v2576_v53 = vunpack.i.h.bf16 %v2574_v61 }
 0x37d   :  { %2670 = vpow2.f32 %v1163_v51  ;;  %v1141_v52 = vsub.f32 %v3110_v57, %v1115_v33 }
 0x37e   :  { %2672 = vpow2.f32 %v1161_v49  ;;  %v2575_v49 = vunpack.i.l.bf16 %v2574_v61 }
 0x37f   :  { %v1167_v54 = vmul.f32 1.442695, %v1141_v52 }
 0x380   :  { %v1121_v56 = vpop.xlane.xlu1 %1120  ;;  %v270_v51 = vpack.c.bf16 %v2575_v49, %v2575_v49 }
 0x381   :  { %v2667_v4 = vpop.eup %2666  ;;  %2674 = vpow2.f32 %v1167_v54  ;;  %v1143_v60 = vsub.f32 %v3114_v5, %v1121_v56 }
 0x382   :  { %v1230_v63 = vmul.f32 %v2667_v4, %v3098_v59  ;;  %2676 = vpow2.f32 %v1165_v55  ;;  %v1464_v55 = vsel %vm1278_vm3, %v270_v51, 0 }
 0x383   :  { %v1171_v0 = vmul.f32 1.442695, %v1143_v60  ;;  %v271_v60 = vpack.c.bf16 %v2576_v53, %v2576_v53 }
 0x384   :  { %v1127_v1 = vpop.xlane.xlu1 %1126  ;;  %v1260_v27 = vpack.c.bf16 %v1230_v63, %v1230_v63 }
 0x385   :  { %2678 = vpow2.f32 %v1171_v0  ;;  %v1145_v7 = vsub.f32 %v3118_v6, %v1127_v1 }
 0x386   :  { %v3163_v57 = vpop.eup %2668  ;;  %2414 = vmatmul.mubr.msk.bf16.vlgmr.msra.gmra.mxu1 %vm285_vm2, %v1260_v27  ;;  %v1510_v27 = vsel %vm1278_vm3, %v271_v60, 0 }
 0x387   :  { %2424 = vmatpush3.bf16.msra.mxu1 %v1418_v2  ;;  %v1197_v59 = vsel %vm285_vm2, %v3163_v57, 0.0  ;;  %2425 = vmatprep.mubr.msk.bf16.mxu1 %vm2815_vm1, %v2812_v11  ;;  %v1175_v13 = vmul.f32 1.442695, %v1145_v7 }
 0x388   :  { %1198 = vadd.xlane.f32.xlu1 %v1197_v59  ;;  %v1181_v25 = vpop.xlane.xlu1 %1180  ;;  %2435 = vmatprep.subr.bf16.mxu1 %v2812_v11 }
 0x389   :  { %2680 = vrcp.f32 %v1181_v25 }
 0x38a   :  { %v3173_v5 = vpop.eup %2670  ;;  %2682 = vpow2.f32 %v1169_v3 }
 0x38b   :  { %v1203_v6 = vsel %vm285_vm2, %v3173_v5, 0.0  ;;  %v3178_v14 = vpop.eup %2672  ;;  %2684 = vpow2.f32 %v1175_v13 }
 0x38c   :  { %1204 = vadd.xlane.f32.xlu0 %v1203_v6  ;;  %v1200_v18 = vsel %vm285_vm2, %v3178_v14, 0.0  ;;  %2686 = vpow2.f32 %v1173_v16  ;;  %v2579_v43 = vpop.permute.xlu1 %2578 }
 0x38d   :  { %2688 = vpow2.f32 %v1177_v38  ;;  %v2580_v54 = vunpack.i.l.bf16 %v2579_v43  ;;  %v2581_v1 = vunpack.i.h.bf16 %v2579_v43 }
 0x38e   :  { %v3180_v15 = vpop.eup %2674 }
 0x38f   :  { %v1209_v19 = vsel %vm285_vm2, %v3180_v15, 0.0  ;;  %v3186_v20 = vpop.eup %2676  ;;  %v272_v62 = vpack.c.bf16 %v2580_v54, %v2580_v54 }
 0x390   :  { %1201 = vadd.xlane.f32.xlu0 %v1200_v18  ;;  %1210 = vadd.xlane.f32.xlu1 %v1209_v19  ;;  %v1206_v41 = vsel %vm285_vm2, %v3186_v20, 0.0 }
 0x391   :  { %v1556_v2 = vsel %vm1278_vm3, %v272_v62, 0 }
 0x392   :  { %v3190_v12 = vpop.eup %2678 }
 0x393   :  { %v1215_v23 = vsel %vm285_vm2, %v3190_v12, 0.0 }
 0x394   :  { %1207 = vadd.xlane.f32.xlu0 %v1206_v41 }
 0x396   :  { %v2681_v22 = vpop.eup %2680 }
 0x397   :  { %v3195_v24 = vpop.eup %2682  ;;  %v1228_v39 = vmul.f32 %v2681_v22, %v3124_v10 }
 0x398   :  { %1216 = vadd.xlane.f32.xlu0 %v1215_v23  ;;  %v1212_v30 = vsel %vm285_vm2, %v3195_v24, 0.0  ;;  %v3200_v31 = vpop.eup %2684 }
 0x399   :  { %v1259_v47 = vpack.c.bf16 %v1228_v39, %v1228_v39  ;;  %v1221_v10 = vsel %vm285_vm2, %v3200_v31, 0.0  ;;  %v3209_v34 = vpop.eup %2686 }
 0x39a   :  { %v1218_v35 = vsel %vm285_vm2, %v3209_v34, 0.0  ;;  %v3220_v40 = vpop.eup %2688 }
 0x39b   :  { %2408 = vmatmul.mubr.msk.bf16.vlgmr.msra.gmra.mxu0 %vm285_vm2, %v1259_v47  ;;  %v1224_v42 = vsel %vm285_vm2, %v3220_v40, 0.0 }
 0x39c   :  { %1213 = vadd.xlane.f32.xlu0 %v1212_v30  ;;  %2418 = vmatpush3.bf16.msra.mxu0 %v1372_v32 }
 0x39d   :  { %2419 = vmatprep.mubr.msk.bf16.mxu0 %vm2815_vm1, %v2812_v11  ;;  %2429 = vmatprep.subr.bf16.mxu0 %v2812_v11 }
 0x3a0   :  { %1222 = vadd.xlane.f32.xlu0 %v1221_v10 }
 0x3a1   :  { %2583 = vrot.lane.b32.xlu1 %v3078_v8, %s2816_s7 }
 0x3a4   :  { %1219 = vadd.xlane.f32.xlu0 %v1218_v35 }
 0x3ba   :  { %2588 = vrot.lane.b32.xlu0 %v3078_v8, %s2818_s9 }
 0x3be   :  { %2593 = vrot.lane.b32.xlu0 %v3078_v8, %s2819_s10 }
 0x3c2   :  { %2598 = vrot.lane.b32.xlu0 %v3078_v8, %s2820_s11 }
 0x3c5   :  { %1225 = vadd.xlane.f32.xlu1 %v1224_v42 }
 0x3d4   :  { %v1187_v44 = vpop.xlane.xlu1 %1186 }
 0x3d5   :  { %2690 = vrcp.f32 %v1187_v44 }
 0x3dc   :  { %v1190_v45 = vpop.xlane.xlu0 %1189 }
 0x3dd   :  { %2692 = vrcp.f32 %v1190_v45  ;;  %v1193_v48 = vpop.xlane.xlu1 %1192 }
 0x3de   :  { %2694 = vrcp.f32 %v1193_v48 }
 0x3e2   :  { %v2691_v50 = vpop.eup %2690 }
 0x3e3   :  { %v1232_v33 = vmul.f32 %v2691_v50, %v3136_v26 }
 0x3e4   :  { %v1196_v52 = vpop.xlane.xlu0 %1195 }
 0x3e5   :  { %2696 = vrcp.f32 %v1196_v52  ;;  %v1261_v8 = vpack.c.bf16 %v1232_v33, %v1232_v33 }
 0x3e7   :  { %2420 = vmatmul.mubr.msk.bf16.vlgmr.msra.gmra.mxu0 %vm285_vm2, %v1261_v8 }
 0x3e8   :  { %2430 = vmatpush3.bf16.msra.mxu0 %v1464_v55  ;;  %2431 = vmatprep.mubr.msk.bf16.mxu0 %vm2815_vm1, %v2812_v11 }
 0x3e9   :  { %2441 = vmatprep.subr.bf16.mxu0 %v2812_v11 }
 0x3ea   :  { %v2693_v56 = vpop.eup %2692 }
 0x3eb   :  { %v2695_v4 = vpop.eup %2694  ;;  %v1234_v26 = vmul.f32 %v2693_v56, %v3140_v29 }
 0x3ec   :  { %v1236_v63 = vmul.f32 %v2695_v4, %v3142_v46  ;;  %v273_v46 = vpack.c.bf16 %v2581_v1, %v2581_v1 }
 0x3ed   :  { %v1262_v17 = vpack.c.bf16 %v1234_v26, %v1234_v26 }
 0x3ee   :  { %v1263_v0 = vpack.c.bf16 %v1236_v63, %v1236_v63  ;;  %v1602_v59 = vsel %vm1278_vm3, %v273_v46, 0 }
 0x3ef   :  { %2426 = vmatmul.mubr.msk.bf16.vlgmr.msra.gmra.mxu1 %vm285_vm2, %v1262_v17 }
 0x3f0   :  { %2432 = vmatmul.mubr.msk.bf16.vlgmr.msra.gmra.mxu0 %vm285_vm2, %v1263_v0  ;;  %2436 = vmatpush3.bf16.msra.mxu1 %v1510_v27 }
 0x3f1   :  { %2442 = vmatpush3.bf16.msra.mxu0 %v1556_v2  ;;  %2437 = vmatprep.mubr.msk.bf16.mxu1 %vm2815_vm1, %v2812_v11 }
 0x3f2   :  { %v2697_v29 = vpop.eup %2696  ;;  %2447 = vmatprep.subr.bf16.mxu1 %v2812_v11  ;;  %2443 = vmatprep.mubr.msk.bf16.mxu0 %vm2815_vm1, %v2812_v11 }
 0x3f3   :  { %v1238_v3 = vmul.f32 %v2697_v29, %v3148_v58  ;;  %2453 = vmatprep.subr.bf16.mxu0 %v2812_v11 }
 0x3f5   :  { %v1264_v7 = vpack.c.bf16 %v1238_v3, %v1238_v3 }
 0x3f7   :  { %2438 = vmatmul.mubr.msk.bf16.vlgmr.msra.gmra.mxu1 %vm285_vm2, %v1264_v7 }
 0x3f8   :  { %2448 = vmatpush3.bf16.msra.mxu1 %v1602_v59  ;;  %2449 = vmatprep.mubr.msk.bf16.mxu1 %vm2815_vm1, %v2812_v11 }
 0x3f9   :  { %2459 = vmatprep.subr.bf16.mxu1 %v2812_v11 }
 0x411   :  { %v1199_v25 = vpop.xlane.xlu1 %1198 }
 0x412   :  { %2698 = vrcp.f32 %v1199_v25 }
 0x415   :  { %v1205_v9 = vpop.xlane.xlu0 %1204 }
 0x416   :  { %2700 = vrcp.f32 %v1205_v9 }
 0x419   :  { %v1202_v13 = vpop.xlane.xlu0 %1201  ;;  %v1211_v6 = vpop.xlane.xlu1 %1210 }
 0x41a   :  { %2702 = vrcp.f32 %v1202_v13 }
 0x41d   :  { %v1208_v58 = vpop.xlane.xlu0 %1207  ;;  %v2584_v16 = vpop.permute.xlu1 %2583 }
 0x41e   :  { %2704 = vrcp.f32 %v1208_v58  ;;  %v2585_v18 = vunpack.i.l.bf16 %v2584_v16  ;;  %v2586_v47 = vunpack.i.h.bf16 %v2584_v16 }
 0x41f   :  { %v2699_v19 = vpop.eup %2698  ;;  %2706 = vrcp.f32 %v1211_v6 }
 0x420   :  { %v274_v41 = vpack.c.bf16 %v2585_v18, %v2585_v18  ;;  %v1240_v21 = vmul.f32 %v2699_v19, %v3163_v57  ;;  %v275_v10 = vpack.c.bf16 %v2586_v47, %v2586_v47 }
 0x421   :  { %v1217_v22 = vpop.xlane.xlu0 %1216 }
 0x422   :  { %v1265_v23 = vpack.c.bf16 %v1240_v21, %v1240_v21  ;;  %v1648_v28 = vsel %vm1278_vm3, %v274_v41, 0  ;;  %v1694_v43 = vsel %vm1278_vm3, %v275_v10, 0 }
 0x423   :  { %v2701_v39 = vpop.eup %2700 }
 0x424   :  { %2444 = vmatmul.mubr.msk.bf16.vlgmr.msra.gmra.mxu0 %vm285_vm2, %v1265_v23  ;;  %v1244_v32 = vmul.f32 %v2701_v39, %v3173_v5 }
 0x425   :  { %2454 = vmatpush3.bf16.msra.mxu0 %v1648_v28  ;;  %v1214_v30 = vpop.xlane.xlu0 %1213  ;;  %2455 = vmatprep.mubr.msk.bf16.mxu0 %vm2815_vm1, %v2812_v11 }
 0x426   :  { %2708 = vrcp.f32 %v1214_v30  ;;  %2465 = vmatprep.subr.bf16.mxu0 %v2812_v11  ;;  %v1267_v38 = vpack.c.bf16 %v1244_v32, %v1244_v32 }
 0x427   :  { %v2703_v57 = vpop.eup %2702  ;;  %2710 = vrcp.f32 %v1217_v22 }
 0x428   :  { %v1242_v35 = vmul.f32 %v2703_v57, %v3178_v14 }
 0x429   :  { %v1223_v36 = vpop.xlane.xlu0 %1222 }
 0x42a   :  { %v1266_v37 = vpack.c.bf16 %v1242_v35, %v1242_v35 }
 0x42b   :  { %v2705_v42 = vpop.eup %2704 }
 0x42c   :  { %2450 = vmatmul.mubr.msk.bf16.vlgmr.msra.gmra.mxu1 %vm285_vm2, %v1266_v37  ;;  %2456 = vmatmul.mubr.msk.bf16.vlgmr.msra.gmra.mxu0 %vm285_vm2, %v1267_v38  ;;  %v1246_v5 = vmul.f32 %v2705_v42, %v3186_v20  ;;  %v2707_v14 = vpop.eup %2706 }
 0x42d   :  { %2460 = vmatpush3.bf16.msra.mxu1 %v1694_v43  ;;  %v1220_v44 = vpop.xlane.xlu0 %1219  ;;  %2461 = vmatprep.mubr.msk.bf16.mxu1 %vm2815_vm1, %v2812_v11  ;;  %v1248_v52 = vmul.f32 %v2707_v14, %v3180_v15 }
 0x42e   :  { %2712 = vrcp.f32 %v1220_v44  ;;  %2471 = vmatprep.subr.bf16.mxu1 %v2812_v11  ;;  %2467 = vmatprep.mubr.msk.bf16.mxu0 %vm2815_vm1, %v2812_v11  ;;  %v1268_v49 = vpack.c.bf16 %v1246_v5, %v1246_v5 }
 0x42f   :  { %2714 = vrcp.f32 %v1223_v36  ;;  %v1269_v26 = vpack.c.bf16 %v1248_v52, %v1248_v52 }
 0x431   :  { %v2589_v61 = vpop.permute.xlu0 %2588 }
 0x432   :  { %v2591_v45 = vunpack.i.h.bf16 %v2589_v61  ;;  %v2590_v48 = vunpack.i.l.bf16 %v2589_v61 }
 0x433   :  { %v2709_v50 = vpop.eup %2708 }
 0x434   :  { %v277_v51 = vpack.c.bf16 %v2591_v45, %v2591_v45  ;;  %v276_v33 = vpack.c.bf16 %v2590_v48, %v2590_v48  ;;  %2462 = vmatmul.mubr.msk.bf16.vlgmr.msra.gmra.mxu1 %vm285_vm2, %v1268_v49  ;;  %v1250_v20 = vmul.f32 %v2709_v50, %v3195_v24  ;;  %v2711_v15 = vpop.eup %2710 }
 0x435   :  { %v2594_v8 = vpop.permute.xlu0 %2593  ;;  %2473 = vmatprep.mubr.msk.bf16.mxu1 %vm2815_vm1, %v2812_v11  ;;  %v1252_v2 = vmul.f32 %v2711_v15, %v3190_v12 }
 0x436   :  { %v2596_v53 = vunpack.i.h.bf16 %v2594_v8  ;;  %v2595_v55 = vunpack.i.l.bf16 %v2594_v8  ;;  %v1740_v54 = vsel %vm1278_vm3, %v276_v33, 0  ;;  %v1786_v56 = vsel %vm1278_vm3, %v277_v51, 0 }
 0x437   :  { %2466 = vmatpush3.bf16.msra.mxu0 %v1740_v54  ;;  %2472 = vmatpush3.bf16.msra.mxu1 %v1786_v56  ;;  %v1270_v17 = vpack.c.bf16 %v1250_v20, %v1250_v20  ;;  %v1271_v7 = vpack.c.bf16 %v1252_v2, %v1252_v2 }
 0x438   :  { %v279_v4 = vpack.c.bf16 %v2596_v53, %v2596_v53  ;;  %v278_v60 = vpack.c.bf16 %v2595_v55, %v2595_v55  ;;  %2477 = vmatprep.subr.bf16.mxu0 %v2812_v11  ;;  %2483 = vmatprep.subr.bf16.mxu1 %v2812_v11 }
 0x439   :  { %v2599_v62 = vpop.permute.xlu0 %2598 }
 0x43a   :  { %v2600_v63 = vunpack.i.l.bf16 %v2599_v62  ;;  %2468 = vmatmul.mubr.msk.bf16.vlgmr.msra.gmra.mxu0 %vm285_vm2, %v1269_v26  ;;  %v1832_v24 = vsel %vm1278_vm3, %v278_v60, 0  ;;  %v1878_v0 = vsel %vm1278_vm3, %v279_v4, 0  ;;  %v2601_v27 = vunpack.i.h.bf16 %v2599_v62 }
 0x43b   :  { %v2713_v1 = vpop.eup %2712  ;;  %2478 = vmatpush3.bf16.msra.mxu0 %v1832_v24  ;;  %2479 = vmatprep.mubr.msk.bf16.mxu0 %vm2815_vm1, %v2812_v11 }
 0x43c   :  { %2474 = vmatmul.mubr.msk.bf16.vlgmr.msra.gmra.mxu1 %vm285_vm2, %v1270_v17  ;;  %2489 = vmatprep.subr.bf16.mxu0 %v2812_v11  ;;  %v280_v29 = vpack.c.bf16 %v2600_v63, %v2600_v63  ;;  %v1254_v46 = vmul.f32 %v2713_v1, %v3209_v34  ;;  %v281_v3 = vpack.c.bf16 %v2601_v27, %v2601_v27  ;;  %v2715_v59 = vpop.eup %2714  ;;  %v2650_v27 = vld [vmem:[#allocation7 + $0x18] sm:$0xff]  }
 0x43d   :  { %2484 = vmatpush3.bf16.msra.mxu1 %v1878_v0  ;;  %2485 = vmatprep.mubr.msk.bf16.mxu1 %vm2815_vm1, %v2812_v11  ;;  %v1256_v13 = vmul.f32 %v2715_v59, %v3200_v31 }
 0x43e   :  { %2495 = vmatprep.subr.bf16.mxu1 %v2812_v11  ;;  %v1924_v25 = vsel %vm1278_vm3, %v280_v29, 0  ;;  %v1272_v9 = vpack.c.bf16 %v1254_v46, %v1254_v46  ;;  %v1970_v12 = vsel %vm1278_vm3, %v281_v3, 0  ;;  %v2651_v3 = vld [vmem:[#allocation7 + $0x10] sm:$0xff]  }
 0x43f   :  { %v1273_v58 = vpack.c.bf16 %v1256_v13, %v1256_v13 }
 0x442   :  { %2480 = vmatmul.mubr.msk.bf16.vlgmr.msra.gmra.mxu0 %vm285_vm2, %v1271_v7 }
 0x443   :  { %2490 = vmatpush3.bf16.msra.mxu0 %v1924_v25  ;;  %2491 = vmatprep.mubr.msk.bf16.mxu0 %vm2815_vm1, %v2812_v11 }
 0x444   :  { %2486 = vmatmul.mubr.msk.bf16.vlgmr.msra.gmra.mxu1 %vm285_vm2, %v1272_v9  ;;  %2501 = vmatprep.subr.bf16.mxu0 %v2812_v11 }
 0x445   :  { %2496 = vmatpush3.bf16.msra.mxu1 %v1970_v12  ;;  %2497 = vmatprep.mubr.msk.bf16.mxu1 %vm2815_vm1, %v2812_v11  ;;  %v2652_v12 = vld [vmem:[#allocation7 + $0x8] sm:$0xff]  }
 0x446   :  { %v3298_v34 = vpop.f32.mrf.mxu1 }
 0x448   :  { %v2415_v6 = vpop.f32.mrf.mxu1 }
 0x44a   :  { %v1365_v16 = vpop.f32.mrf.mxu1  ;;  %2492 = vmatmul.mubr.msk.bf16.vlgmr.msra.gmra.mxu0 %vm285_vm2, %v1273_v58 }
 0x44b   :  { %2509 = vmatprep.mubr.msk.bf16.mxu0 %vm2815_vm1, %v2812_v11  ;;  %2502 = vmatpush3.bf16.msra.mxu0 %v2650_v27  ;;  %v2234_v27 = vld [vmem:[%s3336_s3] ss:$0 sm:$0xff] }
 0x44c   :  { %v2416_v18 = vpop.f32.mrf.mxu1  ;;  %2503 = vmatprep.subr.bf16.mxu0 %v2812_v11 }
 0x44e   :  { %v1226_v19 = vpop.xlane.xlu1 %1225 }
 0x44f   :  { %2716 = vrcp.f32 %v1226_v19  ;;  %2504 = vmatpush3.bf16.msra.mxu0 %v2651_v3 }
 0x450   :  { %2505 = vmatprep.subr.bf16.mxu0 %v2812_v11 }
 0x453   :  { %2506 = vmatpush3.bf16.msra.mxu0 %v2652_v12 }
 0x454   :  { %2507 = vmatprep.subr.bf16.mxu0 %v2812_v11 }
 0x45b   :  { %v3303_v41 = vpop.f32.mrf.mxu0 }
 0x45c   :  { %v2717_v31 = vpop.eup %2716 }
 0x45d   :  { %v1258_v21 = vmul.f32 %v2717_v31, %v3220_v40  ;;  %v2409_v22 = vpop.f32.mrf.mxu0 }
 0x45f   :  { %v1274_v23 = vpack.c.bf16 %v1258_v21, %v1258_v21  ;;  %v1319_v28 = vpop.f32.mrf.mxu0 }
 0x461   :  { %2498 = vmatmul.mubr.msk.bf16.vlgmr.msra.gmra.mxu1 %vm285_vm2, %v1274_v23  ;;  %v2410_v39 = vpop.f32.mrf.mxu0 }
 0x4a7   :  { %v1408_v47 = vpop.f32.mrf.mxu0 }
 0x4a9   :  { %v2421_v30 = vpop.f32.mrf.mxu0 }
 0x4ab   :  { %v1411_v32 = vpop.f32.mrf.mxu0 }
 0x4ad   :  { %v2422_v57 = vpop.f32.mrf.mxu0 }
 0x4af   :  { %v1454_v10 = vpop.f32.mrf.mxu1 }
 0x4b0   :  { %v2602_v35 = vpack.i.bf16 %v1454_v10, %v1408_v47  ;;  %v1500_v36 = vpop.f32.mrf.mxu0  ;;  %v2653_v47 = vld [vmem:[#allocation7] sm:$0xff]  }
 0x4b1   :  { %v2427_v37 = vpop.f32.mrf.mxu1  ;;  %2508 = vmatpush3.bf16.msra.mxu0 %v2653_v47 }
 0x4b2   :  { %v2433_v38 = vpop.f32.mrf.mxu0  ;;  %2603 = vrot.lane.b32.xlu0 %v2602_v35, %s2806_s19 }
 0x4b3   :  { %v1457_v42 = vpop.f32.mrf.mxu1 }
 0x4b4   :  { %v1503_v43 = vpop.f32.mrf.mxu0 }
 0x4b5   :  { %v2428_v40 = vpop.f32.mrf.mxu1 }
 0x4b6   :  { %v2434_v44 = vpop.f32.mrf.mxu0 }
 0x4b7   :  { %v1546_v5 = vpop.f32.mrf.mxu1 }
 0x4b8   :  { %v2607_v14 = vpack.i.bf16 %v1546_v5, %v1500_v36 }
 0x4b9   :  { %v2439_v61 = vpop.f32.mrf.mxu1 }
 0x4ba   :  { %2608 = vrot.lane.b32.xlu0 %v2607_v14, %s2821_s12 }
 0x4bb   :  { %v1549_v45 = vpop.f32.mrf.mxu1 }
 0x4bd   :  { %v2440_v48 = vpop.f32.mrf.mxu1 }
 0x4e4   :  { %v1592_v49 = vpop.f32.mrf.mxu0 }
 0x4e6   :  { %v2445_v50 = vpop.f32.mrf.mxu0 }
 0x4e8   :  { %v1595_v51 = vpop.f32.mrf.mxu0 }
 0x4ea   :  { %v2446_v33 = vpop.f32.mrf.mxu0 }
 0x4ec   :  { %v1638_v52 = vpop.f32.mrf.mxu1  ;;  %v1684_v8 = vpop.f32.mrf.mxu0 }
 0x4ed   :  { %v2612_v20 = vpack.i.bf16 %v1638_v52, %v1592_v49 }
 0x4ee   :  { %v2451_v53 = vpop.f32.mrf.mxu1  ;;  %v2457_v55 = vpop.f32.mrf.mxu0 }
 0x4ef   :  { %2613 = vrot.lane.b32.xlu1 %v2612_v20, %s2822_s13 }
 0x4f0   :  { %v1641_v54 = vpop.f32.mrf.mxu1  ;;  %v1687_v56 = vpop.f32.mrf.mxu0 }
 0x4f2   :  { %v2452_v4 = vpop.f32.mrf.mxu1  ;;  %v2458_v60 = vpop.f32.mrf.mxu0 }
 0x4f4   :  { %v1730_v26 = vpop.f32.mrf.mxu1 }
 0x4f5   :  { %v2617_v15 = vpack.i.bf16 %v1730_v26, %v1684_v8 }
 0x4f6   :  { %v2463_v62 = vpop.f32.mrf.mxu1 }
 0x4f7   :  { %2618 = vrot.lane.b32.xlu0 %v2617_v15, %s2823_s14 }
 0x4f8   :  { %v1733_v63 = vpop.f32.mrf.mxu1 }
 0x4fa   :  { %v2464_v24 = vpop.f32.mrf.mxu1  ;;  %v1776_v17 = vpop.f32.mrf.mxu0 }
 0x4fc   :  { %v2469_v0 = vpop.f32.mrf.mxu0  ;;  %v1822_v1 = vpop.f32.mrf.mxu1 }
 0x4fd   :  { %v2622_v2 = vpack.i.bf16 %v1822_v1, %v1776_v17 }
 0x4fe   :  { %v1779_v29 = vpop.f32.mrf.mxu0  ;;  %v2475_v46 = vpop.f32.mrf.mxu1 }
 0x4ff   :  { %2623 = vrot.lane.b32.xlu0 %v2622_v2, %s2824_s15 }
 0x500   :  { %v2470_v7 = vpop.f32.mrf.mxu0  ;;  %v1825_v59 = vpop.f32.mrf.mxu1 }
 0x502   :  { %v2476_v25 = vpop.f32.mrf.mxu1  ;;  %v1868_v9 = vpop.f32.mrf.mxu0 }
 0x504   :  { %v2481_v13 = vpop.f32.mrf.mxu0  ;;  %v1914_v6 = vpop.f32.mrf.mxu1 }
 0x505   :  { %v2627_v58 = vpack.i.bf16 %v1914_v6, %v1868_v9 }
 0x506   :  { %v1871_v16 = vpop.f32.mrf.mxu0  ;;  %v2487_v18 = vpop.f32.mrf.mxu1 }
 0x507   :  { %2628 = vrot.lane.b32.xlu0 %v2627_v58, %s2825_s16 }
 0x508   :  { %v2482_v19 = vpop.f32.mrf.mxu0  ;;  %v1917_v31 = vpop.f32.mrf.mxu1 }
 0x50a   :  { %v2488_v21 = vpop.f32.mrf.mxu1  ;;  %v1960_v22 = vpop.f32.mrf.mxu0 }
 0x50c   :  { %v2493_v23 = vpop.f32.mrf.mxu0 }
 0x50e   :  { %v1963_v28 = vpop.f32.mrf.mxu0 }
 0x510   :  { %v2494_v39 = vpop.f32.mrf.mxu0 }
 0x521   :  { %v2006_v30 = vpop.f32.mrf.mxu1 }
 0x522   :  { %v2632_v32 = vpack.i.bf16 %v2006_v30, %v1960_v22 }
 0x523   :  { %v2499_v57 = vpop.f32.mrf.mxu1 }
 0x524   :  { %2633 = vrot.lane.b32.xlu0 %v2632_v32, %s2826_s17  ;;  %v2604_v36 = vpop.permute.xlu0 %2603 }
 0x525   :  { %v2009_v10 = vpop.f32.mrf.mxu1  ;;  %v2606_v43 = vunpack.i.h.bf16 %v2604_v36  ;;  %v2605_v40 = vunpack.i.l.bf16 %v2604_v36 }
 0x527   :  { %v2500_v35 = vpop.f32.mrf.mxu1  ;;  %v2069_v50 = vsel %vm285_vm2, %v3298_v34, %v2606_v43  ;;  %v2068_v51 = vsel %vm285_vm2, %v3303_v41, %v2605_v40 }
 0x52c   :  { %v2609_v37 = vpop.permute.xlu0 %2608 }
 0x52d   :  { %v2611_v44 = vunpack.i.h.bf16 %v2609_v37  ;;  %v2610_v5 = vunpack.i.l.bf16 %v2609_v37 }
 0x52f   :  { %v2072_v8 = vsel %vm2070_vm4, %v2069_v50, %v2611_v44  ;;  %v2071_v20 = vsel %vm2070_vm4, %v2068_v51, %v2610_v5 }
 0x561   :  { %v2614_v42 = vpop.permute.xlu1 %2613 }
 0x562   :  { %v2616_v14 = vunpack.i.h.bf16 %v2614_v42  ;;  %v2615_v61 = vunpack.i.l.bf16 %v2614_v42 }
 0x564   :  { %v2075_v54 = vsel %vm2073_vm5, %v2072_v8, %v2616_v14  ;;  %v2074_v56 = vsel %vm2073_vm5, %v2071_v20, %v2615_v61 }
 0x569   :  { %v2619_v38 = vpop.permute.xlu0 %2618 }
 0x56a   :  { %v2621_v48 = vunpack.i.h.bf16 %v2619_v38  ;;  %v2620_v49 = vunpack.i.l.bf16 %v2619_v38 }
 0x56c   :  { %v2078_v4 = vsel %vm2076_vm6, %v2075_v54, %v2621_v48  ;;  %v2077_v60 = vsel %vm2076_vm6, %v2074_v56, %v2620_v49 }
 0x571   :  { %v2624_v11 = vpop.permute.xlu0 %2623 }
 0x572   :  { %v2626_v33 = vunpack.i.h.bf16 %v2624_v11  ;;  %v2625_v52 = vunpack.i.l.bf16 %v2624_v11 }
 0x574   :  { %v2081_v26 = vsel %vm2079_vm7, %v2078_v4, %v2626_v33  ;;  %v2080_v41 = vsel %vm2079_vm7, %v2077_v60, %v2625_v52 }
 0x579   :  { %v2629_v45 = vpop.permute.xlu0 %2628 }
 0x57a   :  { %v2631_v53 = vunpack.i.h.bf16 %v2629_v45  ;;  %v2630_v55 = vunpack.i.l.bf16 %v2629_v45 }
 0x57c   :  { %v2084_v63 = vsel %vm2082_vm8, %v2081_v26, %v2631_v53  ;;  %v2083_v24 = vsel %vm2082_vm8, %v2080_v41, %v2630_v55 }
 0x596   :  { %v2634_v34 = vpop.permute.xlu0 %2633 }
 0x597   :  { %v2636_v15 = vunpack.i.h.bf16 %v2634_v34  ;;  %v2635_v62 = vunpack.i.l.bf16 %v2634_v34 }
 0x599   :  { %v2087_v17 = vsel %vm2085_vm9, %v2084_v63, %v2636_v15  ;;  %v2086_v0 = vsel %vm2085_vm9, %v2083_v24, %v2635_v62 }
 0x59a   :  { %v2088_v1 = vpack.c.bf16 %v2087_v17, %v2086_v0 }
 0x59c   :  { %2510 = vmatmul.mubr.msk.bf16.vlgmr.msra.gmra.mxu0 %vm115_vm0, %v2088_v1 }
 0x65c   :  { %v2165_v2 = vpop.f32.mrf.mxu0 }
 0x65d   :  { %v2166_v29 = vadd.f32 %v2234_v27, %v2165_v2 }
 0x65e   :  { %v2511_v46 = vpop.f32.mrf.mxu0 }
 0x65f   :  { %2172 = vst.msk [vmem:[#allocation8] sm:$0xff] %vm115_vm0, %v2166_v29 }
 0x660   :  { %v2168_v3 = vpop.f32.mrf.mxu0 }
 0x661   :  { %v2169_v7 = vadd.f32 %v2234_v27, %v2168_v3 }
 0x662   :  { %v2512_v59 = vpop.f32.mrf.mxu0 }
 0x663   :  { %2173 = vst.msk [vmem:[#allocation8 + $0x8] sm:$0xff] %vm115_vm0, %v2169_v7 }
 0x664   :  { %2789 = shalt.err (!%p2786_p5)
}
 0x665   :  { %2185 = dma.vmem_to_hbm [thread:$0]  %s2180_s23, 256, %s3337_s4, [#allocation4], %s2805_s18, %s2805_s18, %s2806_s19  }
 0x666   :  { %2802 = dma.done.wait [#allocation4], 256  }
 0x667   :  { %2803 = vsyncadd [#allocation4], 4294967040 }
 0x668   :  { %2189 = vsyncpa [#allocation3], 1 }
 0x669   :  { %2190 = vsyncpa [#allocation6], 1 }
 0x66a   :  { %2191 = vsyncpa [#allocation4], 1 }

</bundles_post_ra>
